<compile_context>
chip_gen: v7x
topology: tpu7x:2x2x1
jax: 0.10.0
libtpu: 0.0.40
codegen_flags: <defaults>
</compile_context>

<pallas_src>
import jax
import jax.numpy as jnp
from jax.experimental import pallas as pl
from jax.experimental.pallas import tpu as pltpu   # noqa: F401  (TPU backend)

# ---- small, structure-preserving hyperparameters ---------------------------
B = 2            # batch
NCH = 8          # EEG channels (nCh)
NTIME = 128      # time samples (nTime) -> one full 128-lane vreg row
F = 16           # conv feature maps
KT = 14          # temporal kernel length (hardcoded 14 in the module)
P = 35           # avg-pool window (time)
S = 7            # avg-pool stride (time)
CLS = 4          # classes
T1 = NTIME - KT + 1          # time after 'valid' temporal conv      (115)
T2 = (T1 - P) // S + 1       # time after avg pool                   (12)
D = F * T2                   # flattened feature dim (linear_in)     (192)
BN_EPS = 1e-5


# ---- fused Pallas kernel -----------------------------------------------------
def fused_kernel(x_ref, wconv_ref, shift_ref, mpool_ref,
                 whp_ref, sel_ref, bias_ref, out_ref):
    """Whole ShallowConvNet forward (inference) for the full batch.

    x_ref     : (B*NCH, NTIME)          input, batch/channels on sublanes
    wconv_ref : (KT, B*F, B*NCH)        per-tap combined conv weights
                                        (temporal x spatial x BN-scale,
                                         block-diagonal over batch)
    shift_ref : (B*F, 1)                folded BatchNorm shift
    mpool_ref : (T1, T2)                pooling matrix (1/P folded in)
    whp_ref   : (B*F, T2*CLS)           regrouped head weights
    sel_ref   : (B, B*F)                per-batch feature-sum selector
    bias_ref  : (1, CLS)                head bias
    out_ref   : (B, CLS)                log-probabilities
    """
    x = x_ref[...]                                             # (B*NCH, NTIME)

    # temporal+spatial conv (BN scale folded) as KT small MXU matmuls
    y = jnp.dot(wconv_ref[0], x[:, 0:T1],
                preferred_element_type=jnp.float32)            # (B*F, T1)
    for k in range(1, KT):
        y = y + jnp.dot(wconv_ref[k], x[:, k:k + T1],
                        preferred_element_type=jnp.float32)

    # BatchNorm shift (eval mode), then square
    y = y + shift_ref[...]
    y = y * y

    # average pool over time as one MXU matmul (1/P folded into mpool)
    pooled = jnp.dot(y, mpool_ref[...],
                     preferred_element_type=jnp.float32)       # (B*F, T2)
    logp = jnp.log(pooled)                                     # single EUP pass

    # linear head: a[b*F+f, c] = sum_p logp[b*F+f, p] * w_head[f*T2+p, c]
    a = logp[:, 0:1] * whp_ref[:, 0:CLS]
    for p in range(1, T2):
        a = a + logp[:, p:p + 1] * whp_ref[:, p * CLS:(p + 1) * CLS]

    # sum the F feature rows of each batch block + bias  -> logits (B, CLS)
    logits = jnp.dot(sel_ref[...], a,
                     preferred_element_type=jnp.float32) + bias_ref[...]

    # log-softmax (numerically stabilized), single lane-dense store
    m = jnp.max(logits, axis=1, keepdims=True)
    lse = jnp.log(jnp.sum(jnp.exp(logits - m), axis=1, keepdims=True)) + m
    out_ref[...] = logits - lse


# ---- wrapper -----------------------------------------------------------------
def shallow_conv_net(x4, wconv, shift_rep, mpool, whp, sel, b_head):
    """x4: (B, 1, NCH, NTIME) float32, NCHW like the PyTorch module."""
    x2 = x4.reshape(B * NCH, NTIME)        # contiguous -> free reshape

    return pl.pallas_call(
        fused_kernel,
        out_shape=jax.ShapeDtypeStruct((B, CLS), jnp.float32),
        grid=(1,),
        in_specs=[
            pl.BlockSpec((B * NCH, NTIME), lambda i: (0, 0)),
            pl.BlockSpec((KT, B * F, B * NCH), lambda i: (0, 0, 0)),
            pl.BlockSpec((B * F, 1), lambda i: (0, 0)),
            pl.BlockSpec((T1, T2), lambda i: (0, 0)),
            pl.BlockSpec((B * F, T2 * CLS), lambda i: (0, 0)),
            pl.BlockSpec((B, B * F), lambda i: (0, 0)),
            pl.BlockSpec((1, CLS), lambda i: (0, 0)),
        ],
        out_specs=pl.BlockSpec((B, CLS), lambda i: (0, 0)),
    )(x2, wconv, shift_rep, mpool, whp, sel, b_head)


# ---- parameter folding (done once, outside the per-inference path) -----------
def fold_params(w_temporal, w_spatial, bn_scale, bn_shift, w_head):
    eye_b = jnp.eye(B, dtype=jnp.float32)
    ws_scaled = w_spatial * bn_scale                           # (F, NCH), BN scale folded
    # combined per-tap conv weight, block-diagonal over batch:
    #   wconv[k, b*F+f, b*NCH+ch] = w_temporal[f, k] * ws_scaled[f, ch]
    wcomb = w_temporal.T[:, :, None] * ws_scaled[None, :, :]   # (KT, F, NCH)
    wconv = (eye_b[None, :, None, :, None] *
             wcomb[:, None, :, None, :]).reshape(KT, B * F, B * NCH)
    shift_rep = jnp.tile(bn_shift, (B, 1))                     # (B*F, 1)
    # pooling matrix with the 1/P average folded in
    t = jnp.arange(T1)[:, None]
    p = jnp.arange(T2)[None, :]
    mpool = jnp.where((t >= p * S) & (t < p * S + P),
                      1.0 / P, 0.0).astype(jnp.float32)        # (T1, T2)
    # head weight regrouped: whp[b*F+f, p*CLS + c] = w_head[f*T2 + p, c]
    whp = jnp.tile(w_head.reshape(F, T2 * CLS), (B, 1))        # (B*F, T2*CLS)
    # selector summing the F feature rows of each batch block
    sel = jnp.repeat(eye_b, F, axis=1)                         # (B, B*F)
    return wconv, shift_rep, mpool, whp, sel


# ---- pure-JAX reference (mirrors the PyTorch op order) ------------------------
def reference(x4, w_temporal, w_spatial, bn_scale, bn_shift, w_head, b_head):
    x = x4[:, 0]                                               # (B, NCH, NTIME)
    shifts = jnp.stack([x[:, :, k:k + T1] for k in range(KT)], axis=-1)  # (B,NCH,T1,KT)
    c1 = jnp.einsum('bctk,fk->bfct', shifts, w_temporal)       # (B, F, NCH, T1)
    c2 = jnp.einsum('bfct,fc->bft', c1, w_spatial)             # (B, F, T1)
    y = c2 * bn_scale[None, :, :] + bn_shift[None, :, :]
    y = y * y
    pooled = jnp.stack(
        [jnp.mean(y[:, :, p * S:p * S + P], axis=2) for p in range(T2)], axis=-1)
    feat = jnp.log(pooled).reshape(B, D)
    logits = feat @ w_head + b_head
    return jax.nn.log_softmax(logits, axis=1)


# ---- main ---------------------------------------------------------------------
if __name__ == "__main__":
    key = jax.random.PRNGKey(0)
    ks = jax.random.split(key, 8)

    # Deterministic synthetic parameters (shapes from the module's __init__).
    # max_norm re-projection of Conv2dWithNorm / LinearWithNorm is a training-time
    # weight constraint; small random weights already satisfy it here.
    w_temporal = 0.1 * jax.random.normal(ks[0], (F, KT), jnp.float32)   # (F,1,1,14) squeezed
    w_spatial = 0.1 * jax.random.normal(ks[1], (F, NCH), jnp.float32)   # (F,1,NCH,1) squeezed
    gamma = 1.0 + 0.1 * jax.random.normal(ks[2], (F,), jnp.float32)
    beta = 0.1 * jax.random.normal(ks[3], (F,), jnp.float32)
    run_mean = 0.1 * jax.random.normal(ks[4], (F,), jnp.float32)
    run_var = 1.0 + 0.5 * jax.random.uniform(ks[5], (F,), jnp.float32)
    # fold eval-mode BatchNorm into scale/shift
    bn_scale = (gamma / jnp.sqrt(run_var + BN_EPS)).reshape(F, 1)
    bn_shift = (beta - run_mean * bn_scale[:, 0]).reshape(F, 1)
    # PyTorch Linear weight is (CLS, D); store transposed for row-major matmul.
    w_head = 0.1 * jax.random.normal(ks[6], (D, CLS), jnp.float32)
    b_head = 0.1 * jax.random.normal(ks[7], (1, CLS), jnp.float32)

    # Input (B, 1, nCh, nTime), NCHW like the PyTorch module.
    x4 = jax.random.normal(jax.random.PRNGKey(42), (B, 1, NCH, NTIME), jnp.float32)

    wconv, shift_rep, mpool, whp, sel = fold_params(
        w_temporal, w_spatial, bn_scale, bn_shift, w_head)

    out = shallow_conv_net(x4, wconv, shift_rep, mpool, whp, sel, b_head)
    out = jax.block_until_ready(out)

    ref = reference(x4, w_temporal, w_spatial, bn_scale, bn_shift, w_head, b_head)
    assert out.shape == (B, CLS)
    assert jnp.allclose(out, ref, rtol=1e-4, atol=1e-4), (out, ref)

    # TODO(synk): training-mode BatchNorm (batch statistics) and stochastic
    # Dropout are intentionally not modeled; kernel implements inference.
    print("KERNEL_OK")
</pallas_src>

<mosaic_0001>
module attributes {stable_mosaic.version = 11 : i64} {
  func.func @fused_kernel(%arg0: i32, %arg1: memref<16x128xf32, #tpu.memory_space<vmem>>, %arg2: memref<14x32x16xf32, #tpu.memory_space<vmem>>, %arg3: memref<32x1xf32, #tpu.memory_space<vmem>>, %arg4: memref<115x12xf32, #tpu.memory_space<vmem>>, %arg5: memref<32x48xf32, #tpu.memory_space<vmem>>, %arg6: memref<2x32xf32, #tpu.memory_space<vmem>>, %arg7: memref<1x4xf32, #tpu.memory_space<vmem>>, %arg8: memref<2x4xf32, #tpu.memory_space<vmem>>) attributes {dimension_semantics = [#tpu.dimension_semantics<arbitrary>], iteration_bounds = array<i64: 1>, scalar_prefetch = 0 : i64, scratch_operands = 0 : i64, tpu.core_type = #tpu.core_type<tc>, window_params = [{pipeline_mode = #tpu.pipeline_mode<synchronous>, transform_indices = @transform_0, window_bounds = array<i64: 16, 128>}, {pipeline_mode = #tpu.pipeline_mode<synchronous>, transform_indices = @transform_1, window_bounds = array<i64: 14, 32, 16>}, {pipeline_mode = #tpu.pipeline_mode<synchronous>, transform_indices = @transform_2, window_bounds = array<i64: 32, 1>}, {pipeline_mode = #tpu.pipeline_mode<synchronous>, transform_indices = @transform_3, window_bounds = array<i64: 115, 12>}, {pipeline_mode = #tpu.pipeline_mode<synchronous>, transform_indices = @transform_4, window_bounds = array<i64: 32, 48>}, {pipeline_mode = #tpu.pipeline_mode<synchronous>, transform_indices = @transform_5, window_bounds = array<i64: 2, 32>}, {pipeline_mode = #tpu.pipeline_mode<synchronous>, transform_indices = @transform_6, window_bounds = array<i64: 1, 4>}, {pipeline_mode = #tpu.pipeline_mode<synchronous>, transform_indices = @transform_7, window_bounds = array<i64: 2, 4>}]} {
    %c0 = arith.constant 0 : index
    %c0_0 = arith.constant 0 : index
    %0 = vector.load %arg1[%c0, %c0_0] : memref<16x128xf32, #tpu.memory_space<vmem>>, vector<16x128xf32>
    %c0_1 = arith.constant 0 : index
    %c0_2 = arith.constant 0 : index
    %c0_3 = arith.constant 0 : index
    %1 = vector.load %arg2[%c0_1, %c0_2, %c0_3] : memref<14x32x16xf32, #tpu.memory_space<vmem>>, vector<1x32x16xf32>
    %2 = vector.shape_cast %1 : vector<1x32x16xf32> to vector<32x16xf32>
    %3 = vector.extract_strided_slice %0 {offsets = [0, 0], sizes = [16, 115], strides = [1, 1]} : vector<16x128xf32> to vector<16x115xf32>
    %cst = arith.constant dense<0.000000e+00> : vector<32x115xf32>
    %4 = tpu.matmul %2, %3, %cst {dimension_numbers = #tpu.dot_dimension_numbers<[1], [0], [0], [1], [0, 0, 1, 1], [], []>} : vector<32x16xf32>, vector<16x115xf32>, vector<32x115xf32> -> vector<32x115xf32>
    %c1 = arith.constant 1 : index
    %c0_4 = arith.constant 0 : index
    %c0_5 = arith.constant 0 : index
    %5 = vector.load %arg2[%c1, %c0_4, %c0_5] : memref<14x32x16xf32, #tpu.memory_space<vmem>>, vector<1x32x16xf32>
    %6 = vector.shape_cast %5 : vector<1x32x16xf32> to vector<32x16xf32>
    %7 = vector.extract_strided_slice %0 {offsets = [0, 1], sizes = [16, 115], strides = [1, 1]} : vector<16x128xf32> to vector<16x115xf32>
    %cst_6 = arith.constant dense<0.000000e+00> : vector<32x115xf32>
    %8 = tpu.matmul %6, %7, %cst_6 {dimension_numbers = #tpu.dot_dimension_numbers<[1], [0], [0], [1], [0, 0, 1, 1], [], []>} : vector<32x16xf32>, vector<16x115xf32>, vector<32x115xf32> -> vector<32x115xf32>
    %9 = arith.addf %4, %8 : vector<32x115xf32>
    %c2 = arith.constant 2 : index
    %c0_7 = arith.constant 0 : index
    %c0_8 = arith.constant 0 : index
    %10 = vector.load %arg2[%c2, %c0_7, %c0_8] : memref<14x32x16xf32, #tpu.memory_space<vmem>>, vector<1x32x16xf32>
    %11 = vector.shape_cast %10 : vector<1x32x16xf32> to vector<32x16xf32>
    %12 = vector.extract_strided_slice %0 {offsets = [0, 2], sizes = [16, 115], strides = [1, 1]} : vector<16x128xf32> to vector<16x115xf32>
    %cst_9 = arith.constant dense<0.000000e+00> : vector<32x115xf32>
    %13 = tpu.matmul %11, %12, %cst_9 {dimension_numbers = #tpu.dot_dimension_numbers<[1], [0], [0], [1], [0, 0, 1, 1], [], []>} : vector<32x16xf32>, vector<16x115xf32>, vector<32x115xf32> -> vector<32x115xf32>
    %14 = arith.addf %9, %13 : vector<32x115xf32>
    %c3 = arith.constant 3 : index
    %c0_10 = arith.constant 0 : index
    %c0_11 = arith.constant 0 : index
    %15 = vector.load %arg2[%c3, %c0_10, %c0_11] : memref<14x32x16xf32, #tpu.memory_space<vmem>>, vector<1x32x16xf32>
    %16 = vector.shape_cast %15 : vector<1x32x16xf32> to vector<32x16xf32>
    %17 = vector.extract_strided_slice %0 {offsets = [0, 3], sizes = [16, 115], strides = [1, 1]} : vector<16x128xf32> to vector<16x115xf32>
    %cst_12 = arith.constant dense<0.000000e+00> : vector<32x115xf32>
    %18 = tpu.matmul %16, %17, %cst_12 {dimension_numbers = #tpu.dot_dimension_numbers<[1], [0], [0], [1], [0, 0, 1, 1], [], []>} : vector<32x16xf32>, vector<16x115xf32>, vector<32x115xf32> -> vector<32x115xf32>
    %19 = arith.addf %14, %18 : vector<32x115xf32>
    %c4 = arith.constant 4 : index
    %c0_13 = arith.constant 0 : index
    %c0_14 = arith.constant 0 : index
    %20 = vector.load %arg2[%c4, %c0_13, %c0_14] : memref<14x32x16xf32, #tpu.memory_space<vmem>>, vector<1x32x16xf32>
    %21 = vector.shape_cast %20 : vector<1x32x16xf32> to vector<32x16xf32>
    %22 = vector.extract_strided_slice %0 {offsets = [0, 4], sizes = [16, 115], strides = [1, 1]} : vector<16x128xf32> to vector<16x115xf32>
    %cst_15 = arith.constant dense<0.000000e+00> : vector<32x115xf32>
    %23 = tpu.matmul %21, %22, %cst_15 {dimension_numbers = #tpu.dot_dimension_numbers<[1], [0], [0], [1], [0, 0, 1, 1], [], []>} : vector<32x16xf32>, vector<16x115xf32>, vector<32x115xf32> -> vector<32x115xf32>
    %24 = arith.addf %19, %23 : vector<32x115xf32>
    %c5 = arith.constant 5 : index
    %c0_16 = arith.constant 0 : index
    %c0_17 = arith.constant 0 : index
    %25 = vector.load %arg2[%c5, %c0_16, %c0_17] : memref<14x32x16xf32, #tpu.memory_space<vmem>>, vector<1x32x16xf32>
    %26 = vector.shape_cast %25 : vector<1x32x16xf32> to vector<32x16xf32>
    %27 = vector.extract_strided_slice %0 {offsets = [0, 5], sizes = [16, 115], strides = [1, 1]} : vector<16x128xf32> to vector<16x115xf32>
    %cst_18 = arith.constant dense<0.000000e+00> : vector<32x115xf32>
    %28 = tpu.matmul %26, %27, %cst_18 {dimension_numbers = #tpu.dot_dimension_numbers<[1], [0], [0], [1], [0, 0, 1, 1], [], []>} : vector<32x16xf32>, vector<16x115xf32>, vector<32x115xf32> -> vector<32x115xf32>
    %29 = arith.addf %24, %28 : vector<32x115xf32>
    %c6 = arith.constant 6 : index
    %c0_19 = arith.constant 0 : index
    %c0_20 = arith.constant 0 : index
    %30 = vector.load %arg2[%c6, %c0_19, %c0_20] : memref<14x32x16xf32, #tpu.memory_space<vmem>>, vector<1x32x16xf32>
    %31 = vector.shape_cast %30 : vector<1x32x16xf32> to vector<32x16xf32>
    %32 = vector.extract_strided_slice %0 {offsets = [0, 6], sizes = [16, 115], strides = [1, 1]} : vector<16x128xf32> to vector<16x115xf32>
    %cst_21 = arith.constant dense<0.000000e+00> : vector<32x115xf32>
    %33 = tpu.matmul %31, %32, %cst_21 {dimension_numbers = #tpu.dot_dimension_numbers<[1], [0], [0], [1], [0, 0, 1, 1], [], []>} : vector<32x16xf32>, vector<16x115xf32>, vector<32x115xf32> -> vector<32x115xf32>
    %34 = arith.addf %29, %33 : vector<32x115xf32>
    %c7 = arith.constant 7 : index
    %c0_22 = arith.constant 0 : index
    %c0_23 = arith.constant 0 : index
    %35 = vector.load %arg2[%c7, %c0_22, %c0_23] : memref<14x32x16xf32, #tpu.memory_space<vmem>>, vector<1x32x16xf32>
    %36 = vector.shape_cast %35 : vector<1x32x16xf32> to vector<32x16xf32>
    %37 = vector.extract_strided_slice %0 {offsets = [0, 7], sizes = [16, 115], strides = [1, 1]} : vector<16x128xf32> to vector<16x115xf32>
    %cst_24 = arith.constant dense<0.000000e+00> : vector<32x115xf32>
    %38 = tpu.matmul %36, %37, %cst_24 {dimension_numbers = #tpu.dot_dimension_numbers<[1], [0], [0], [1], [0, 0, 1, 1], [], []>} : vector<32x16xf32>, vector<16x115xf32>, vector<32x115xf32> -> vector<32x115xf32>
    %39 = arith.addf %34, %38 : vector<32x115xf32>
    %c8 = arith.constant 8 : index
    %c0_25 = arith.constant 0 : index
    %c0_26 = arith.constant 0 : index
    %40 = vector.load %arg2[%c8, %c0_25, %c0_26] : memref<14x32x16xf32, #tpu.memory_space<vmem>>, vector<1x32x16xf32>
    %41 = vector.shape_cast %40 : vector<1x32x16xf32> to vector<32x16xf32>
    %42 = vector.extract_strided_slice %0 {offsets = [0, 8], sizes = [16, 115], strides = [1, 1]} : vector<16x128xf32> to vector<16x115xf32>
    %cst_27 = arith.constant dense<0.000000e+00> : vector<32x115xf32>
    %43 = tpu.matmul %41, %42, %cst_27 {dimension_numbers = #tpu.dot_dimension_numbers<[1], [0], [0], [1], [0, 0, 1, 1], [], []>} : vector<32x16xf32>, vector<16x115xf32>, vector<32x115xf32> -> vector<32x115xf32>
    %44 = arith.addf %39, %43 : vector<32x115xf32>
    %c9 = arith.constant 9 : index
    %c0_28 = arith.constant 0 : index
    %c0_29 = arith.constant 0 : index
    %45 = vector.load %arg2[%c9, %c0_28, %c0_29] : memref<14x32x16xf32, #tpu.memory_space<vmem>>, vector<1x32x16xf32>
    %46 = vector.shape_cast %45 : vector<1x32x16xf32> to vector<32x16xf32>
    %47 = vector.extract_strided_slice %0 {offsets = [0, 9], sizes = [16, 115], strides = [1, 1]} : vector<16x128xf32> to vector<16x115xf32>
    %cst_30 = arith.constant dense<0.000000e+00> : vector<32x115xf32>
    %48 = tpu.matmul %46, %47, %cst_30 {dimension_numbers = #tpu.dot_dimension_numbers<[1], [0], [0], [1], [0, 0, 1, 1], [], []>} : vector<32x16xf32>, vector<16x115xf32>, vector<32x115xf32> -> vector<32x115xf32>
    %49 = arith.addf %44, %48 : vector<32x115xf32>
    %c10 = arith.constant 10 : index
    %c0_31 = arith.constant 0 : index
    %c0_32 = arith.constant 0 : index
    %50 = vector.load %arg2[%c10, %c0_31, %c0_32] : memref<14x32x16xf32, #tpu.memory_space<vmem>>, vector<1x32x16xf32>
    %51 = vector.shape_cast %50 : vector<1x32x16xf32> to vector<32x16xf32>
    %52 = vector.extract_strided_slice %0 {offsets = [0, 10], sizes = [16, 115], strides = [1, 1]} : vector<16x128xf32> to vector<16x115xf32>
    %cst_33 = arith.constant dense<0.000000e+00> : vector<32x115xf32>
    %53 = tpu.matmul %51, %52, %cst_33 {dimension_numbers = #tpu.dot_dimension_numbers<[1], [0], [0], [1], [0, 0, 1, 1], [], []>} : vector<32x16xf32>, vector<16x115xf32>, vector<32x115xf32> -> vector<32x115xf32>
    %54 = arith.addf %49, %53 : vector<32x115xf32>
    %c11 = arith.constant 11 : index
    %c0_34 = arith.constant 0 : index
    %c0_35 = arith.constant 0 : index
    %55 = vector.load %arg2[%c11, %c0_34, %c0_35] : memref<14x32x16xf32, #tpu.memory_space<vmem>>, vector<1x32x16xf32>
    %56 = vector.shape_cast %55 : vector<1x32x16xf32> to vector<32x16xf32>
    %57 = vector.extract_strided_slice %0 {offsets = [0, 11], sizes = [16, 115], strides = [1, 1]} : vector<16x128xf32> to vector<16x115xf32>
    %cst_36 = arith.constant dense<0.000000e+00> : vector<32x115xf32>
    %58 = tpu.matmul %56, %57, %cst_36 {dimension_numbers = #tpu.dot_dimension_numbers<[1], [0], [0], [1], [0, 0, 1, 1], [], []>} : vector<32x16xf32>, vector<16x115xf32>, vector<32x115xf32> -> vector<32x115xf32>
    %59 = arith.addf %54, %58 : vector<32x115xf32>
    %c12 = arith.constant 12 : index
    %c0_37 = arith.constant 0 : index
    %c0_38 = arith.constant 0 : index
    %60 = vector.load %arg2[%c12, %c0_37, %c0_38] : memref<14x32x16xf32, #tpu.memory_space<vmem>>, vector<1x32x16xf32>
    %61 = vector.shape_cast %60 : vector<1x32x16xf32> to vector<32x16xf32>
    %62 = vector.extract_strided_slice %0 {offsets = [0, 12], sizes = [16, 115], strides = [1, 1]} : vector<16x128xf32> to vector<16x115xf32>
    %cst_39 = arith.constant dense<0.000000e+00> : vector<32x115xf32>
    %63 = tpu.matmul %61, %62, %cst_39 {dimension_numbers = #tpu.dot_dimension_numbers<[1], [0], [0], [1], [0, 0, 1, 1], [], []>} : vector<32x16xf32>, vector<16x115xf32>, vector<32x115xf32> -> vector<32x115xf32>
    %64 = arith.addf %59, %63 : vector<32x115xf32>
    %c13 = arith.constant 13 : index
    %c0_40 = arith.constant 0 : index
    %c0_41 = arith.constant 0 : index
    %65 = vector.load %arg2[%c13, %c0_40, %c0_41] : memref<14x32x16xf32, #tpu.memory_space<vmem>>, vector<1x32x16xf32>
    %66 = vector.shape_cast %65 : vector<1x32x16xf32> to vector<32x16xf32>
    %67 = vector.extract_strided_slice %0 {offsets = [0, 13], sizes = [16, 115], strides = [1, 1]} : vector<16x128xf32> to vector<16x115xf32>
    %cst_42 = arith.constant dense<0.000000e+00> : vector<32x115xf32>
    %68 = tpu.matmul %66, %67, %cst_42 {dimension_numbers = #tpu.dot_dimension_numbers<[1], [0], [0], [1], [0, 0, 1, 1], [], []>} : vector<32x16xf32>, vector<16x115xf32>, vector<32x115xf32> -> vector<32x115xf32>
    %69 = arith.addf %64, %68 : vector<32x115xf32>
    %c0_43 = arith.constant 0 : index
    %c0_44 = arith.constant 0 : index
    %70 = vector.load %arg3[%c0_43, %c0_44] : memref<32x1xf32, #tpu.memory_space<vmem>>, vector<32x1xf32>
    %71 = vector.broadcast %70 : vector<32x1xf32> to vector<32x115xf32>
    %72 = arith.addf %69, %71 : vector<32x115xf32>
    %73 = arith.mulf %72, %72 : vector<32x115xf32>
    %c0_45 = arith.constant 0 : index
    %c0_46 = arith.constant 0 : index
    %74 = vector.load %arg4[%c0_45, %c0_46] : memref<115x12xf32, #tpu.memory_space<vmem>>, vector<115x12xf32>
    %cst_47 = arith.constant dense<0.000000e+00> : vector<32x12xf32>
    %75 = tpu.matmul %73, %74, %cst_47 {dimension_numbers = #tpu.dot_dimension_numbers<[1], [0], [0], [1], [0, 0, 1, 1], [], []>} : vector<32x115xf32>, vector<115x12xf32>, vector<32x12xf32> -> vector<32x12xf32>
    %76 = math.log %75 : vector<32x12xf32>
    %77 = vector.extract_strided_slice %76 {offsets = [0, 0], sizes = [32, 1], strides = [1, 1]} : vector<32x12xf32> to vector<32x1xf32>
    %c0_48 = arith.constant 0 : index
    %c0_49 = arith.constant 0 : index
    %78 = vector.load %arg5[%c0_48, %c0_49] : memref<32x48xf32, #tpu.memory_space<vmem>>, vector<32x4xf32>
    %79 = vector.broadcast %77 : vector<32x1xf32> to vector<32x4xf32>
    %80 = arith.mulf %79, %78 : vector<32x4xf32>
    %81 = vector.extract_strided_slice %76 {offsets = [0, 1], sizes = [32, 1], strides = [1, 1]} : vector<32x12xf32> to vector<32x1xf32>
    %c0_50 = arith.constant 0 : index
    %c4_51 = arith.constant 4 : index
    %82 = vector.load %arg5[%c0_50, %c4_51] : memref<32x48xf32, #tpu.memory_space<vmem>>, vector<32x4xf32>
    %83 = vector.broadcast %81 : vector<32x1xf32> to vector<32x4xf32>
    %84 = arith.mulf %83, %82 : vector<32x4xf32>
    %85 = arith.addf %80, %84 : vector<32x4xf32>
    %86 = vector.extract_strided_slice %76 {offsets = [0, 2], sizes = [32, 1], strides = [1, 1]} : vector<32x12xf32> to vector<32x1xf32>
    %c0_52 = arith.constant 0 : index
    %c8_53 = arith.constant 8 : index
    %87 = vector.load %arg5[%c0_52, %c8_53] : memref<32x48xf32, #tpu.memory_space<vmem>>, vector<32x4xf32>
    %88 = vector.broadcast %86 : vector<32x1xf32> to vector<32x4xf32>
    %89 = arith.mulf %88, %87 : vector<32x4xf32>
    %90 = arith.addf %85, %89 : vector<32x4xf32>
    %91 = vector.extract_strided_slice %76 {offsets = [0, 3], sizes = [32, 1], strides = [1, 1]} : vector<32x12xf32> to vector<32x1xf32>
    %c0_54 = arith.constant 0 : index
    %c12_55 = arith.constant 12 : index
    %92 = vector.load %arg5[%c0_54, %c12_55] : memref<32x48xf32, #tpu.memory_space<vmem>>, vector<32x4xf32>
    %93 = vector.broadcast %91 : vector<32x1xf32> to vector<32x4xf32>
    %94 = arith.mulf %93, %92 : vector<32x4xf32>
    %95 = arith.addf %90, %94 : vector<32x4xf32>
    %96 = vector.extract_strided_slice %76 {offsets = [0, 4], sizes = [32, 1], strides = [1, 1]} : vector<32x12xf32> to vector<32x1xf32>
    %c0_56 = arith.constant 0 : index
    %c16 = arith.constant 16 : index
    %97 = vector.load %arg5[%c0_56, %c16] : memref<32x48xf32, #tpu.memory_space<vmem>>, vector<32x4xf32>
    %98 = vector.broadcast %96 : vector<32x1xf32> to vector<32x4xf32>
    %99 = arith.mulf %98, %97 : vector<32x4xf32>
    %100 = arith.addf %95, %99 : vector<32x4xf32>
    %101 = vector.extract_strided_slice %76 {offsets = [0, 5], sizes = [32, 1], strides = [1, 1]} : vector<32x12xf32> to vector<32x1xf32>
    %c0_57 = arith.constant 0 : index
    %c20 = arith.constant 20 : index
    %102 = vector.load %arg5[%c0_57, %c20] : memref<32x48xf32, #tpu.memory_space<vmem>>, vector<32x4xf32>
    %103 = vector.broadcast %101 : vector<32x1xf32> to vector<32x4xf32>
    %104 = arith.mulf %103, %102 : vector<32x4xf32>
    %105 = arith.addf %100, %104 : vector<32x4xf32>
    %106 = vector.extract_strided_slice %76 {offsets = [0, 6], sizes = [32, 1], strides = [1, 1]} : vector<32x12xf32> to vector<32x1xf32>
    %c0_58 = arith.constant 0 : index
    %c24 = arith.constant 24 : index
    %107 = vector.load %arg5[%c0_58, %c24] : memref<32x48xf32, #tpu.memory_space<vmem>>, vector<32x4xf32>
    %108 = vector.broadcast %106 : vector<32x1xf32> to vector<32x4xf32>
    %109 = arith.mulf %108, %107 : vector<32x4xf32>
    %110 = arith.addf %105, %109 : vector<32x4xf32>
    %111 = vector.extract_strided_slice %76 {offsets = [0, 7], sizes = [32, 1], strides = [1, 1]} : vector<32x12xf32> to vector<32x1xf32>
    %c0_59 = arith.constant 0 : index
    %c28 = arith.constant 28 : index
    %112 = vector.load %arg5[%c0_59, %c28] : memref<32x48xf32, #tpu.memory_space<vmem>>, vector<32x4xf32>
    %113 = vector.broadcast %111 : vector<32x1xf32> to vector<32x4xf32>
    %114 = arith.mulf %113, %112 : vector<32x4xf32>
    %115 = arith.addf %110, %114 : vector<32x4xf32>
    %116 = vector.extract_strided_slice %76 {offsets = [0, 8], sizes = [32, 1], strides = [1, 1]} : vector<32x12xf32> to vector<32x1xf32>
    %c0_60 = arith.constant 0 : index
    %c32 = arith.constant 32 : index
    %117 = vector.load %arg5[%c0_60, %c32] : memref<32x48xf32, #tpu.memory_space<vmem>>, vector<32x4xf32>
    %118 = vector.broadcast %116 : vector<32x1xf32> to vector<32x4xf32>
    %119 = arith.mulf %118, %117 : vector<32x4xf32>
    %120 = arith.addf %115, %119 : vector<32x4xf32>
    %121 = vector.extract_strided_slice %76 {offsets = [0, 9], sizes = [32, 1], strides = [1, 1]} : vector<32x12xf32> to vector<32x1xf32>
    %c0_61 = arith.constant 0 : index
    %c36 = arith.constant 36 : index
    %122 = vector.load %arg5[%c0_61, %c36] : memref<32x48xf32, #tpu.memory_space<vmem>>, vector<32x4xf32>
    %123 = vector.broadcast %121 : vector<32x1xf32> to vector<32x4xf32>
    %124 = arith.mulf %123, %122 : vector<32x4xf32>
    %125 = arith.addf %120, %124 : vector<32x4xf32>
    %126 = vector.extract_strided_slice %76 {offsets = [0, 10], sizes = [32, 1], strides = [1, 1]} : vector<32x12xf32> to vector<32x1xf32>
    %c0_62 = arith.constant 0 : index
    %c40 = arith.constant 40 : index
    %127 = vector.load %arg5[%c0_62, %c40] : memref<32x48xf32, #tpu.memory_space<vmem>>, vector<32x4xf32>
    %128 = vector.broadcast %126 : vector<32x1xf32> to vector<32x4xf32>
    %129 = arith.mulf %128, %127 : vector<32x4xf32>
    %130 = arith.addf %125, %129 : vector<32x4xf32>
    %131 = vector.extract_strided_slice %76 {offsets = [0, 11], sizes = [32, 1], strides = [1, 1]} : vector<32x12xf32> to vector<32x1xf32>
    %c0_63 = arith.constant 0 : index
    %c44 = arith.constant 44 : index
    %132 = vector.load %arg5[%c0_63, %c44] : memref<32x48xf32, #tpu.memory_space<vmem>>, vector<32x4xf32>
    %133 = vector.broadcast %131 : vector<32x1xf32> to vector<32x4xf32>
    %134 = arith.mulf %133, %132 : vector<32x4xf32>
    %135 = arith.addf %130, %134 : vector<32x4xf32>
    %c0_64 = arith.constant 0 : index
    %c0_65 = arith.constant 0 : index
    %136 = vector.load %arg6[%c0_64, %c0_65] : memref<2x32xf32, #tpu.memory_space<vmem>>, vector<2x32xf32>
    %cst_66 = arith.constant dense<0.000000e+00> : vector<2x4xf32>
    %137 = tpu.matmul %136, %135, %cst_66 {dimension_numbers = #tpu.dot_dimension_numbers<[1], [0], [0], [1], [0, 0, 1, 1], [], []>} : vector<2x32xf32>, vector<32x4xf32>, vector<2x4xf32> -> vector<2x4xf32>
    %c0_67 = arith.constant 0 : index
    %c0_68 = arith.constant 0 : index
    %138 = vector.load %arg7[%c0_67, %c0_68] : memref<1x4xf32, #tpu.memory_space<vmem>>, vector<1x4xf32>
    %139 = vector.broadcast %138 : vector<1x4xf32> to vector<2x4xf32>
    %140 = arith.addf %137, %139 : vector<2x4xf32>
    %cst_69 = arith.constant dense<0xFF800000> : vector<2xf32>
    %141 = vector.multi_reduction <maximumf>, %140, %cst_69 [1] : vector<2x4xf32> to vector<2xf32>
    %142 = vector.shape_cast %141 : vector<2xf32> to vector<2x1xf32>
    %143 = vector.broadcast %142 : vector<2x1xf32> to vector<2x4xf32>
    %144 = arith.subf %140, %143 : vector<2x4xf32>
    %145 = math.exp %144 : vector<2x4xf32>
    %cst_70 = arith.constant dense<0.000000e+00> : vector<2xf32>
    %146 = vector.multi_reduction <add>, %145, %cst_70 [1] : vector<2x4xf32> to vector<2xf32>
    %147 = vector.shape_cast %146 : vector<2xf32> to vector<2x1xf32>
    %148 = math.log %147 : vector<2x1xf32>
    %149 = arith.addf %148, %142 : vector<2x1xf32>
    %150 = vector.broadcast %149 : vector<2x1xf32> to vector<2x4xf32>
    %151 = arith.subf %140, %150 : vector<2x4xf32>
    %c0_71 = arith.constant 0 : index
    %c0_72 = arith.constant 0 : index
    %152 = vector.load %arg8[%c0_71, %c0_72] : memref<2x4xf32, #tpu.memory_space<vmem>>, vector<2x4xf32>
    tpu.vector_store %arg8[%c0_71, %c0_72], %151 {strides = array<i32>} : memref<2x4xf32, #tpu.memory_space<vmem>>, vector<2x4xf32>,
    return
  }
  func.func @transform_0(%arg0: i32) -> (i32, i32) {
    %c0_i32 = arith.constant 0 : i32
    %c0_i32_0 = arith.constant 0 : i32
    %c0_i32_1 = arith.constant 0 : i32
    return %c0_i32, %c0_i32_0 : i32, i32
  }
  func.func @transform_1(%arg0: i32) -> (i32, i32, i32) {
    %c0_i32 = arith.constant 0 : i32
    %c0_i32_0 = arith.constant 0 : i32
    %c0_i32_1 = arith.constant 0 : i32
    %c0_i32_2 = arith.constant 0 : i32
    return %c0_i32, %c0_i32_0, %c0_i32_1 : i32, i32, i32
  }
  func.func @transform_2(%arg0: i32) -> (i32, i32) {
    %c0_i32 = arith.constant 0 : i32
    %c0_i32_0 = arith.constant 0 : i32
    %c0_i32_1 = arith.constant 0 : i32
    return %c0_i32, %c0_i32_0 : i32, i32
  }
  func.func @transform_3(%arg0: i32) -> (i32, i32) {
    %c0_i32 = arith.constant 0 : i32
    %c0_i32_0 = arith.constant 0 : i32
    %c0_i32_1 = arith.constant 0 : i32
    return %c0_i32, %c0_i32_0 : i32, i32
  }
  func.func @transform_4(%arg0: i32) -> (i32, i32) {
    %c0_i32 = arith.constant 0 : i32
    %c0_i32_0 = arith.constant 0 : i32
    %c0_i32_1 = arith.constant 0 : i32
    return %c0_i32, %c0_i32_0 : i32, i32
  }
  func.func @transform_5(%arg0: i32) -> (i32, i32) {
    %c0_i32 = arith.constant 0 : i32
    %c0_i32_0 = arith.constant 0 : i32
    %c0_i32_1 = arith.constant 0 : i32
    return %c0_i32, %c0_i32_0 : i32, i32
  }
  func.func @transform_6(%arg0: i32) -> (i32, i32) {
    %c0_i32 = arith.constant 0 : i32
    %c0_i32_0 = arith.constant 0 : i32
    %c0_i32_1 = arith.constant 0 : i32
    return %c0_i32, %c0_i32_0 : i32, i32
  }
  func.func @transform_7(%arg0: i32) -> (i32, i32) {
    %c0_i32 = arith.constant 0 : i32
    %c0_i32_0 = arith.constant 0 : i32
    %c0_i32_1 = arith.constant 0 : i32
    return %c0_i32, %c0_i32_0 : i32, i32
  }
}

</mosaic_0001>

<bundles_post_ra>
// kernel: tpu_custom_call.1
= control target key start
LH: loop header
LB: loop body
LE: loop exit
PB: predicated region body
PF: predicated region fallthrough
CT: control target
= control target key end

     0   :  { %vm46_vm0 = vcmask 130048   ;;  %s3611_s0 = inlined_call_operand.vmem [shape: f32[16,128], index: 0, kind: input, shape index: {}]   ;;  %s3612_s1 = inlined_call_operand.vmem [shape: f32[14,32,16], index: 1, kind: input, shape index: {}]   ;;  %s3613_s2 = inlined_call_operand.vmem [shape: f32[32,1], index: 2, kind: input, shape index: {}]   ;;  %s3614_s3 = inlined_call_operand.vmem [shape: f32[115,12], index: 3, kind: input, shape index: {}]   ;;  %s3615_s4 = inlined_call_operand.vmem [shape: f32[32,48], index: 4, kind: input, shape index: {}]   ;;  %s3616_s5 = inlined_call_operand.vmem [shape: f32[2,32], index: 5, kind: input, shape index: {}]   ;;  %s3617_s6 = inlined_call_operand.vmem [shape: f32[1,4], index: 6, kind: input, shape index: {}]   ;;  %s3618_s7 = inlined_call_operand.hbm [shape: f32[2,4], index: 7, kind: output, shape index: {}]  }
   0x1   :  { %v27_v0 = vld [vmem:[%s3611_s0] sm:$0xff]  ;;  %v28_v1 = vld [vmem:[%s3611_s0 + $0x8] sm:$0xff] }
   0x2   :  { %v2357_v2 = vld [vmem:[%s3612_s1 + $0xa0] sm:$0xff]  ;;  %v2910_v3 = vpack.i.bf16 %v28_v1, %v27_v0 }
   0x3   :  { %2598 = vmatprep.mubr.msk.f32.mxu0 %vm46_vm0, %v2357_v2 }
   0x4   :  { %12 = vsyncpa [#allocation3], 0  ;;  %s3061_s30 = smov 123   ;;  %s3062_s8 = smov 121   ;;  %v2321_v4 = vld [vmem:[%s3612_s1 + $0x20] sm:$0xff]  ;;  %v3153_v5 = vpack.c.bf16 %v28_v1, %v27_v0  ;;  %v1586_v7 = vld [vmem:[%s3613_s2 + $0x8] sm:$0xff] }
   0x5   :  { %2911 = vrot.lane.b32.xlu0 %v2910_v3, %s3061_s30  ;;  %2921 = vrot.lane.b32.xlu1 %v2910_v3, %s3062_s8  ;;  %s3063_s0 = smov 122   ;;  %s3064_s11 = smov 120   ;;  %v1585_v6 = vld [vmem:[%s3613_s2] sm:$0xff]  ;;  %v3074_v8 = vmov 0   ;;  %v1587_v9 = vld [vmem:[%s3613_s2 + $0x10] sm:$0xff]  ;;  %vm1645_vm1 = vcmask 1042432  }
   0x6   :  { %2548 = vmatprep.mubr.msk.f32.mxu1 %vm46_vm0, %v2321_v4  ;;  %s3065_s12 = smov 127   ;;  %s3066_s13 = smov 119   ;;  %2975 = vset.pattern.permute.xlu1 %v3074_v8  ;;  %v1588_v10 = vld [vmem:[%s3613_s2 + $0x18] sm:$0xff]  ;;  %v2358_v22 = vld [vmem:[%s3612_s1 + $0xa8] sm:$0xff]  ;;  %v2359_v24 = vld [vmem:[%s3612_s1 + $0xb0] sm:$0xff]  ;;  %vm1632_vm2 = vcmask 941056  }
   0x7   :  { %s3067_s14 = smov 126   ;;  %s3068_s15 = smov 118   ;;  %2976 = vset.pattern.permute.xlu0 %v3074_v8  ;;  %v2360_v30 = vld [vmem:[%s3612_s1 + $0xb8] sm:$0xff]  ;;  %v2365_v32 = vld [vmem:[%s3612_s1 + $0xc0] sm:$0xff]  ;;  %v2322_v38 = vld [vmem:[%s3612_s1 + $0x28] sm:$0xff]  ;;  %vm3095_vm3 = vmmov 0  }
   0x8   :  { %s3069_s16 = smov 125   ;;  %s3070_s17 = smov 117   ;;  %v2366_v39 = vld [vmem:[%s3612_s1 + $0xc8] sm:$0xff]  ;;  %v2323_v40 = vld [vmem:[%s3612_s1 + $0x30] sm:$0xff]  ;;  %v2324_v45 = vld [vmem:[%s3612_s1 + $0x38] sm:$0xff]  ;;  %vm2218_vm4 = vcmask 261120  }
   0x9   :  { %2916 = vrot.lane.b32.xlu0 %v2910_v3, %s3063_s0  ;;  %2926 = vrot.lane.b32.xlu1 %v2910_v3, %s3064_s11  ;;  %s3071_s18 = smov 124   ;;  %s3072_s19 = smov 116   ;;  %v2367_v41 = vld [vmem:[%s3612_s1 + $0xd0] sm:$0xff]  ;;  %v2368_v46 = vld [vmem:[%s3612_s1 + $0xd8] sm:$0xff]  ;;  %vm2292_vm5 = vcmask 25600  }
   0xa   :  { %s3073_s20 = smov 115   ;;  %v29_v47 = vld [vmem:[%s3612_s1] sm:$0xff]  ;;  %v30_v53 = vld [vmem:[%s3612_s1 + $0x8] sm:$0xff]  ;;  %v31_v55 = vld [vmem:[%s3612_s1 + $0x10] sm:$0xff]  ;;  %s3087_s0 = smov 108  }
   0xb   :  { %v2373_v48 = vld [vmem:[%s3612_s1 + $0xe0] sm:$0xff]  ;;  %v2374_v54 = vld [vmem:[%s3612_s1 + $0xe8] sm:$0xff]  ;;  %v2375_v56 = vld [vmem:[%s3612_s1 + $0xf0] sm:$0xff]  ;;  %s3093_s21 = smov 84  }
   0xc   :  { %v32_v61 = vld [vmem:[%s3612_s1 + $0x18] sm:$0xff]  ;;  %v2333_v63 = vld [vmem:[%s3612_s1 + $0x40] sm:$0xff] }
   0xd   :  { %2931 = vrot.lane.b32.xlu0 %v2910_v3, %s3065_s12  ;;  %2936 = vrot.lane.b32.xlu1 %v2910_v3, %s3066_s13  ;;  %v2376_v62 = vld [vmem:[%s3612_s1 + $0xf8] sm:$0xff]  ;;  %v2381_v0 = vld [vmem:[%s3612_s1 + $0x100] sm:$0xff] }
  0x11   :  { %2946 = vrot.lane.b32.xlu1 %v2910_v3, %s3067_s14  ;;  %2941 = vrot.lane.b32.xlu0 %v2910_v3, %s3068_s15  ;;  %s3088_s14 = smov 104   ;;  %s3089_s15 = smov 100  }
  0x15   :  { %2956 = vrot.lane.b32.xlu1 %v2910_v3, %s3069_s16  ;;  %2951 = vrot.lane.b32.xlu0 %v2910_v3, %s3070_s17  ;;  %s3090_s16 = smov 96   ;;  %s3091_s17 = smov 92  }
  0x19   :  { %2966 = vrot.lane.b32.xlu1 %v2910_v3, %s3071_s18  ;;  %2961 = vrot.lane.b32.xlu0 %v2910_v3, %s3072_s19 }
  0x1d   :  { %2971 = vrot.lane.b32.xlu0 %v2910_v3, %s3073_s20  ;;  %1591 = vperm.xlu1 %2975, %v1585_v6   ;;  %v2382_v6 = vld [vmem:[%s3612_s1 + $0x108] sm:$0xff]  ;;  %s3092_s20 = smov 88  }
  0x21   :  { %1596 = vperm.xlu0 %2976, %v1586_v7   ;;  %1601 = vperm.xlu1 %2975, %v1587_v9   ;;  %v2335_v7 = vld [vmem:[%s3612_s1 + $0x50] sm:$0xff] }
  0x25   :  { %1606 = vperm.xlu1 %2975, %v1588_v10   ;;  %v2383_v10 = vld [vmem:[%s3612_s1 + $0x110] sm:$0xff] }
  0x77   :  { %v2912_v11 = vpop.permute.xlu0 %2911  ;;  %v2922_v12 = vpop.permute.xlu1 %2921 }
  0x78   :  { %v2914_v13 = vunpack.i.h.bf16 %v2912_v11  ;;  %v2913_v14 = vunpack.i.l.bf16 %v2912_v11  ;;  %v2924_v16 = vunpack.i.h.bf16 %v2922_v12  ;;  %v2923_v17 = vunpack.i.l.bf16 %v2922_v12 }
  0x7a   :  { %v2751_v15 = vpack.c.bf16 %v2914_v13, %v2913_v14  ;;  %v2759_v25 = vpack.c.bf16 %v2924_v16, %v2923_v17  ;;  %v2336_v13 = vld [vmem:[%s3612_s1 + $0x58] sm:$0xff]  ;;  %v2389_v16 = vld [vmem:[%s3612_s1 + $0x120] sm:$0xff] }
  0x7b   :  { %v2917_v18 = vpop.permute.xlu0 %2916  ;;  %v2927_v19 = vpop.permute.xlu1 %2926  ;;  %v2384_v14 = vld [vmem:[%s3612_s1 + $0x118] sm:$0xff] }
  0x7c   :  { %v2919_v20 = vunpack.i.h.bf16 %v2917_v18  ;;  %v2918_v21 = vunpack.i.l.bf16 %v2917_v18  ;;  %2752 = vmatprep.subr.bf16.mxu0 %v2751_v15  ;;  %v2929_v33 = vunpack.i.h.bf16 %v2927_v19  ;;  %v2928_v34 = vunpack.i.l.bf16 %v2927_v19  ;;  %v2342_v19 = vld [vmem:[%s3612_s1 + $0x68] sm:$0xff] }
  0x7d   :  { %2754 = vmatpush3.bf16.msra.mxu0 %v2751_v15  ;;  %v2341_v15 = vld [vmem:[%s3612_s1 + $0x60] sm:$0xff] }
  0x7e   :  { %v2755_v23 = vpack.c.bf16 %v2919_v20, %v2918_v21  ;;  %v2763_v42 = vpack.c.bf16 %v2929_v33, %v2928_v34  ;;  %v2390_v20 = vld [vmem:[%s3612_s1 + $0x128] sm:$0xff]  ;;  %v2343_v21 = vld [vmem:[%s3612_s1 + $0x70] sm:$0xff] }
  0x7f   :  { %v2932_v26 = vpop.permute.xlu0 %2931  ;;  %v2937_v27 = vpop.permute.xlu1 %2936  ;;  %v2351_v34 = vld [vmem:[%s3612_s1 + $0x90] sm:$0xff] }
  0x80   :  { %v2934_v28 = vunpack.i.h.bf16 %v2932_v26  ;;  %v2933_v29 = vunpack.i.l.bf16 %v2932_v26  ;;  %2599 = vmatmul.mubr.msk.f32.vlgmr.msra.gmra.mrb[0].mxu0 %vm46_vm0, %v2358_v22  ;;  %2756 = vmatprep.subr.bf16.mxu0 %v2755_v23  ;;  %v2939_v49 = vunpack.i.h.bf16 %v2937_v27  ;;  %v2938_v50 = vunpack.i.l.bf16 %v2937_v27  ;;  %v2392_v26 = vld [vmem:[%s3612_s1 + $0x138] sm:$0xff]  ;;  %v2349_v27 = vld [vmem:[%s3612_s1 + $0x80] sm:$0xff] }
  0x81   :  { %2758 = vmatpush3.bf16.msra.mxu0 %v2755_v23  ;;  %2601 = vmatprep.mubr.msk.f32.mxu0 %vm46_vm0, %v2359_v24  ;;  %v2391_v23 = vld [vmem:[%s3612_s1 + $0x130] sm:$0xff] }
  0x82   :  { %v2731_v31 = vpack.c.bf16 %v2934_v28, %v2933_v29  ;;  %2760 = vmatprep.subr.bf16.mxu0 %v2759_v25  ;;  %v2767_v57 = vpack.c.bf16 %v2939_v49, %v2938_v50  ;;  %v2397_v28 = vld [vmem:[%s3612_s1 + $0x140] sm:$0xff]  ;;  %v2416_v49 = vld [vmem:[%s3612_s1 + $0x198] sm:$0xff] }
  0x83   :  { %v2947_v35 = vpop.permute.xlu1 %2946  ;;  %v2942_v59 = vpop.permute.xlu0 %2941  ;;  %v2421_v50 = vld [vmem:[%s3612_s1 + $0x1a0] sm:$0xff] }
  0x84   :  { %2732 = vmatprep.subr.bf16.mxu1 %v2731_v31  ;;  %2602 = vmatmul.mubr.msk.f32.gmra.mrb[2].mxu0 %vm46_vm0, %v2360_v30  ;;  %v2949_v36 = vunpack.i.h.bf16 %v2947_v35  ;;  %v2948_v37 = vunpack.i.l.bf16 %v2947_v35  ;;  %v2944_v1 = vunpack.i.h.bf16 %v2942_v59  ;;  %v2943_v2 = vunpack.i.l.bf16 %v2942_v59  ;;  %v2399_v35 = vld [vmem:[%s3612_s1 + $0x150] sm:$0xff] }
  0x85   :  { %2734 = vmatpush3.bf16.msra.mxu1 %v2731_v31  ;;  %2608 = vmatprep.mubr.msk.f32.mxu0 %vm46_vm0, %v2365_v32  ;;  %v2350_v31 = vld [vmem:[%s3612_s1 + $0x88] sm:$0xff] }
  0x86   :  { %2736 = vmatprep.subr.bf16.mxu1 %v3153_v5  ;;  %v2739_v43 = vpack.c.bf16 %v2949_v36, %v2948_v37  ;;  %v2771_v9 = vpack.c.bf16 %v2944_v1, %v2943_v2  ;;  %v2398_v32 = vld [vmem:[%s3612_s1 + $0x148] sm:$0xff]  ;;  %v2352_v37 = vld [vmem:[%s3612_s1 + $0x98] sm:$0xff]  ;;  %v1625_v2 = vld [vmem:[%s3614_s3 + $0x40] sm:$0xff] }
  0x87   :  { %v2957_v44 = vpop.permute.xlu1 %2956  ;;  %v2952_v12 = vpop.permute.xlu0 %2951 }
  0x88   :  { %2549 = vmatmul.mubr.msk.f32.vlgmr.msra.gmra.mrb[0].mxu1 %vm46_vm0, %v2322_v38  ;;  %2609 = vmatmul.mubr.msk.f32.vlgmr.msra.gmra.mrb[0].mxu0 %vm46_vm0, %v2366_v39  ;;  %v2959_v51 = vunpack.i.h.bf16 %v2957_v44  ;;  %v2958_v52 = vunpack.i.l.bf16 %v2957_v44  ;;  %v2954_v17 = vunpack.i.h.bf16 %v2952_v12  ;;  %v2953_v18 = vunpack.i.l.bf16 %v2952_v12  ;;  %v2400_v38 = vld [vmem:[%s3612_s1 + $0x158] sm:$0xff]  ;;  %v2405_v39 = vld [vmem:[%s3612_s1 + $0x160] sm:$0xff]  ;;  %v2407_v44 = vld [vmem:[%s3612_s1 + $0x170] sm:$0xff] }
  0x89   :  { %2762 = vmatpush3.bf16.msra.mxu0 %v2759_v25  ;;  %2551 = vmatprep.mubr.msk.f32.mxu1 %vm46_vm0, %v2323_v40  ;;  %v2344_v25 = vld [vmem:[%s3612_s1 + $0x78] sm:$0xff]  ;;  %v1631_v12 = vld [vmem:[%s3614_s3 + $0x70] sm:$0x7] }
  0x8a   :  { %2611 = vmatprep.mubr.msk.f32.mxu0 %vm46_vm0, %v2367_v41  ;;  %2738 = vmatpush3.bf16.msra.mxu1 %v3153_v5  ;;  %v2743_v58 = vpack.c.bf16 %v2959_v51, %v2958_v52  ;;  %v2334_v5 = vld [vmem:[%s3612_s1 + $0x48] sm:$0xff]  ;;  %v2775_v22 = vpack.c.bf16 %v2954_v17, %v2953_v18  ;;  %v2423_v52 = vld [vmem:[%s3612_s1 + $0x1b0] sm:$0xff] }
  0x8b   :  { %2764 = vmatprep.subr.bf16.mxu0 %v2763_v42  ;;  %2740 = vmatprep.subr.bf16.mxu1 %v2739_v43  ;;  %v2967_v60 = vpop.permute.xlu1 %2966  ;;  %v2962_v24 = vpop.permute.xlu0 %2961  ;;  %v2422_v51 = vld [vmem:[%s3612_s1 + $0x1a8] sm:$0xff] }
  0x8c   :  { %2552 = vmatmul.mubr.msk.f32.gmra.mrb[2].mxu1 %vm46_vm0, %v2324_v45  ;;  %2612 = vmatmul.mubr.msk.f32.gmra.mrb[2].mxu0 %vm46_vm0, %v2368_v46  ;;  %v2969_v3 = vunpack.i.h.bf16 %v2967_v60  ;;  %v2968_v4 = vunpack.i.l.bf16 %v2967_v60  ;;  %v2964_v29 = vunpack.i.h.bf16 %v2962_v24  ;;  %v2963_v30 = vunpack.i.l.bf16 %v2962_v24  ;;  %v2408_v45 = vld [vmem:[%s3612_s1 + $0x178] sm:$0xff]  ;;  %v2413_v46 = vld [vmem:[%s3612_s1 + $0x180] sm:$0xff] }
  0x8d   :  { %2558 = vmatprep.mubr.msk.f32.mxu1 %vm46_vm0, %v29_v47  ;;  %2618 = vmatprep.mubr.msk.f32.mxu0 %vm46_vm0, %v2373_v48  ;;  %v2414_v47 = vld [vmem:[%s3612_s1 + $0x188] sm:$0xff]  ;;  %v2415_v48 = vld [vmem:[%s3612_s1 + $0x190] sm:$0xff]  ;;  %v1621_v60 = vld [vmem:[%s3614_s3 + $0x20] sm:$0xff] }
  0x8e   :  { %v2747_v11 = vpack.c.bf16 %v2969_v3, %v2968_v4  ;;  %v2779_v33 = vpack.c.bf16 %v2964_v29, %v2963_v30  ;;  %v1626_v3 = vld [vmem:[%s3614_s3 + $0x48] sm:$0xff] }
  0x8f   :  { %v2972_v36 = vpop.permute.xlu0 %2971  ;;  %v2803_v4 = vpack.c.bf16 %v1626_v3, %v1625_v2 }
  0x90   :  { %2559 = vmatmul.mubr.msk.f32.vlgmr.msra.gmra.mrb[0].mxu1 %vm46_vm0, %v30_v53  ;;  %2619 = vmatmul.mubr.msk.f32.vlgmr.msra.gmra.mrb[0].mxu0 %vm46_vm0, %v2374_v54  ;;  %v2974_v40 = vunpack.i.h.bf16 %v2972_v36  ;;  %v2973_v41 = vunpack.i.l.bf16 %v2972_v36  ;;  %v2424_v53 = vld [vmem:[%s3612_s1 + $0x1b8] sm:$0xff]  ;;  %v1617_v54 = vld [vmem:[%s3614_s3] sm:$0xff] }
  0x91   :  { %2766 = vmatpush3.bf16.msra.mxu0 %v2763_v42  ;;  %2561 = vmatprep.mubr.msk.f32.mxu1 %vm46_vm0, %v31_v55  ;;  %v2406_v42 = vld [vmem:[%s3612_s1 + $0x168] sm:$0xff]  ;;  %s3086_s1 = smov 112  }
  0x92   :  { %2621 = vmatprep.mubr.msk.f32.mxu0 %vm46_vm0, %v2375_v56  ;;  %2742 = vmatpush3.bf16.msra.mxu1 %v2739_v43  ;;  %v2783_v43 = vpack.c.bf16 %v2974_v40, %v2973_v41  ;;  %v1618_v55 = vld [vmem:[%s3614_s3 + $0x8] sm:$0xff] }
  0x93   :  { %2768 = vmatprep.subr.bf16.mxu0 %v2767_v57  ;;  %2744 = vmatprep.subr.bf16.mxu1 %v2743_v58  ;;  %v2787_v56 = vpack.c.bf16 %v1618_v55, %v1617_v54  ;;  %v3084_v54 = vmov 9   ;;  %v3085_v55 = vmov 10  }
  0x94   :  { %2562 = vmatmul.mubr.msk.f32.gmra.mrb[2].mxu1 %vm46_vm0, %v32_v61  ;;  %2622 = vmatmul.mubr.msk.f32.gmra.mrb[2].mxu0 %vm46_vm0, %v2376_v62  ;;  %v1622_v61 = vld [vmem:[%s3614_s3 + $0x28] sm:$0xff] }
  0x95   :  { %2568 = vmatprep.mubr.msk.f32.mxu1 %vm46_vm0, %v2333_v63  ;;  %2628 = vmatprep.mubr.msk.f32.mxu0 %vm46_vm0, %v2381_v0  ;;  %v2795_v62 = vpack.c.bf16 %v1622_v61, %v1621_v60  ;;  %v1623_v63 = vld [vmem:[%s3614_s3 + $0x30] sm:$0xff]  ;;  %v1624_v0 = vld [vmem:[%s3614_s3 + $0x38] sm:$0xff]  ;;  %v1743_v60 = vld [vmem:[%s3615_s4 + $0x8] sm:$0xff] }
  0x96   :  { %v2799_v1 = vpack.c.bf16 %v1624_v0, %v1623_v63 }
  0x98   :  { %2569 = vmatmul.mubr.msk.f32.vlgmr.msra.gmra.mrb[0].mxu1 %vm46_vm0, %v2334_v5  ;;  %2629 = vmatmul.mubr.msk.f32.vlgmr.msra.gmra.mrb[0].mxu0 %vm46_vm0, %v2382_v6  ;;  %v1627_v5 = vld [vmem:[%s3614_s3 + $0x50] sm:$0xff]  ;;  %v1628_v6 = vld [vmem:[%s3614_s3 + $0x58] sm:$0xff] }
  0x99   :  { %2770 = vmatpush3.bf16.msra.mxu0 %v2767_v57  ;;  %2571 = vmatprep.mubr.msk.f32.mxu1 %vm46_vm0, %v2335_v7  ;;  %v1619_v57 = vld [vmem:[%s3614_s3 + $0x10] sm:$0xff]  ;;  %v2807_v7 = vpack.c.bf16 %v1628_v6, %v1627_v5 }
  0x9a   :  { %2631 = vmatprep.mubr.msk.f32.mxu0 %vm46_vm0, %v2383_v10  ;;  %2746 = vmatpush3.bf16.msra.mxu1 %v2743_v58  ;;  %v1620_v58 = vld [vmem:[%s3614_s3 + $0x18] sm:$0xff]  ;;  %v1630_v10 = vld [vmem:[%s3614_s3 + $0x68] sm:$0xff] }
  0x9b   :  { %2772 = vmatprep.subr.bf16.mxu0 %v2771_v9  ;;  %2748 = vmatprep.subr.bf16.mxu1 %v2747_v11  ;;  %v2791_v59 = vpack.c.bf16 %v1620_v58, %v1619_v57 }
  0x9c   :  { %2572 = vmatmul.mubr.msk.f32.gmra.mrb[2].mxu1 %vm46_vm0, %v2336_v13  ;;  %2632 = vmatmul.mubr.msk.f32.gmra.mrb[2].mxu0 %vm46_vm0, %v2384_v14  ;;  %v1592_v17 = vpop.permute.xlu1 %1591 }
  0x9d   :  { %2578 = vmatprep.mubr.msk.f32.mxu1 %vm46_vm0, %v2341_v15  ;;  %2638 = vmatprep.mubr.msk.f32.mxu0 %vm46_vm0, %v2389_v16 }
  0xa0   :  { %2579 = vmatmul.mubr.msk.f32.vlgmr.msra.gmra.mrb[0].mxu1 %vm46_vm0, %v2342_v19  ;;  %2639 = vmatmul.mubr.msk.f32.vlgmr.msra.gmra.mrb[0].mxu0 %vm46_vm0, %v2390_v20  ;;  %v1602_v18 = vpop.permute.xlu1 %1601  ;;  %v1597_v20 = vpop.permute.xlu0 %1596 }
  0xa1   :  { %2774 = vmatpush3.bf16.msra.mxu0 %v2771_v9  ;;  %2581 = vmatprep.mubr.msk.f32.mxu1 %vm46_vm0, %v2343_v21  ;;  %v1629_v9 = vld [vmem:[%s3614_s3 + $0x60] sm:$0xff] }
  0xa2   :  { %2641 = vmatprep.mubr.msk.f32.mxu0 %vm46_vm0, %v2391_v23  ;;  %2750 = vmatpush3.bf16.msra.mxu1 %v2747_v11  ;;  %v2811_v11 = vpack.c.bf16 %v1630_v10, %v1629_v9 }
  0xa3   :  { %2776 = vmatprep.subr.bf16.mxu0 %v2775_v22  ;;  %2788 = vmatprep.subr.bf16.mxu1 %v2787_v56 }
  0xa4   :  { %2582 = vmatmul.mubr.msk.f32.gmra.mrb[2].mxu1 %vm46_vm0, %v2344_v25  ;;  %2642 = vmatmul.mubr.msk.f32.gmra.mrb[2].mxu0 %vm46_vm0, %v2392_v26  ;;  %v1607_v30 = vpop.permute.xlu1 %1606 }
  0xa5   :  { %2588 = vmatprep.mubr.msk.f32.mxu1 %vm46_vm0, %v2349_v27  ;;  %2648 = vmatprep.mubr.msk.f32.mxu0 %vm46_vm0, %v2397_v28 }
  0xa8   :  { %2589 = vmatmul.mubr.msk.f32.vlgmr.msra.gmra.mrb[0].mxu1 %vm46_vm0, %v2350_v31  ;;  %2649 = vmatmul.mubr.msk.f32.vlgmr.msra.gmra.mrb[0].mxu0 %vm46_vm0, %v2398_v32 }
  0xa9   :  { %2778 = vmatpush3.bf16.msra.mxu0 %v2775_v22  ;;  %2591 = vmatprep.mubr.msk.f32.mxu1 %vm46_vm0, %v2351_v34 }
  0xaa   :  { %2651 = vmatprep.mubr.msk.f32.mxu0 %vm46_vm0, %v2399_v35  ;;  %2780 = vmatprep.subr.bf16.mxu0 %v2779_v33 }
  0xab   :  { %2790 = vmatpush3.bf16.msra.mxu1 %v2787_v56 }
  0xac   :  { %2592 = vmatmul.mubr.msk.f32.gmra.mrb[2].mxu1 %vm46_vm0, %v2352_v37  ;;  %2652 = vmatmul.mubr.msk.f32.gmra.mrb[2].mxu0 %vm46_vm0, %v2400_v38  ;;  %v3075_v37 = vmov 1   ;;  %v3076_v38 = vmov 2  }
  0xad   :  { %2658 = vmatprep.mubr.msk.f32.mxu0 %vm46_vm0, %v2405_v39  ;;  %2792 = vmatprep.subr.bf16.mxu1 %v2791_v59 }
  0xae   :  { %2977 = vset.pattern.permute.xlu1 %v3075_v37  ;;  %2978 = vset.pattern.permute.xlu0 %v3076_v38 }
  0xaf   :  { %2794 = vmatpush3.bf16.msra.mxu1 %v2791_v59 }
  0xb0   :  { %2659 = vmatmul.mubr.msk.f32.vlgmr.msra.gmra.mrb[0].mxu0 %vm46_vm0, %v2406_v42  ;;  %2796 = vmatprep.subr.bf16.mxu1 %v2795_v62 }
  0xb1   :  { %2782 = vmatpush3.bf16.msra.mxu0 %v2779_v33  ;;  %2661 = vmatprep.mubr.msk.f32.mxu0 %vm46_vm0, %v2407_v44 }
  0xb2   :  { %2784 = vmatprep.subr.bf16.mxu0 %v2783_v43 }
  0xb3   :  { %2798 = vmatpush3.bf16.msra.mxu1 %v2795_v62 }
  0xb4   :  { %2662 = vmatmul.mubr.msk.f32.gmra.mrb[2].mxu0 %vm46_vm0, %v2408_v45  ;;  %2800 = vmatprep.subr.bf16.mxu1 %v2799_v1  ;;  %v3077_v45 = vmov 5  }
  0xb5   :  { %2668 = vmatprep.mubr.msk.f32.mxu0 %vm46_vm0, %v2413_v46  ;;  %v3078_v46 = vmov 3  }
  0xb7   :  { %2802 = vmatpush3.bf16.msra.mxu1 %v2799_v1 }
  0xb8   :  { %2669 = vmatmul.mubr.msk.f32.vlgmr.msra.gmra.mrb[0].mxu0 %vm46_vm0, %v2414_v47  ;;  %2804 = vmatprep.subr.bf16.mxu1 %v2803_v4  ;;  %v3079_v47 = vmov 8  }
  0xb9   :  { %2786 = vmatpush3.bf16.msra.mxu0 %v2783_v43  ;;  %2671 = vmatprep.mubr.msk.f32.mxu0 %vm46_vm0, %v2415_v48  ;;  %v3080_v48 = vmov 4  }
  0xbb   :  { %2806 = vmatpush3.bf16.msra.mxu1 %v2803_v4 }
  0xbc   :  { %2672 = vmatmul.mubr.msk.f32.gmra.mrb[2].mxu0 %vm46_vm0, %v2416_v49  ;;  %2808 = vmatprep.subr.bf16.mxu1 %v2807_v7  ;;  %v3081_v49 = vmov 11  }
  0xbd   :  { %2678 = vmatprep.mubr.msk.f32.mxu0 %vm46_vm0, %v2421_v50  ;;  %v3082_v50 = vmov 6  }
  0xbf   :  { %2810 = vmatpush3.bf16.msra.mxu1 %v2807_v7 }
  0xc0   :  { %2679 = vmatmul.mubr.msk.f32.vlgmr.msra.gmra.mrb[0].mxu0 %vm46_vm0, %v2422_v51  ;;  %2812 = vmatprep.subr.bf16.mxu1 %v2811_v11 }
  0xc1   :  { %2681 = vmatprep.mubr.msk.f32.mxu0 %vm46_vm0, %v2423_v52 }
  0xc3   :  { %2814 = vmatpush3.bf16.msra.mxu1 %v2811_v11 }
  0xc4   :  { %2682 = vmatmul.mubr.msk.f32.gmra.mrb[2].mxu0 %vm46_vm0, %v2424_v53  ;;  %2712 = vmatprep.subr.msk.mxu1 %vm1645_vm1, %v1631_v12  ;;  %v3083_v53 = vmov 7  }
  0xc7   :  { %2713 = vmatpush3.msk.msra.mxu1 %vm1645_vm1, %v1631_v12 }
 0x17b   :  { %v2590_v13 = vpop.f32.mrb[0].mxu1 }
 0x17c   :  { %v554_v14 = vpop.f32.mrb[1].mxu1 }
 0x17f   :  { %v2593_v15 = vpop.f32.mrb[2].mxu1 }
 0x180   :  { %v564_v16 = vpop.f32.mrb[3].mxu1 }
 0x193   :  { %v2680_v19 = vpop.f32.mrb[0].mxu0 }
 0x194   :  { %v2821_v21 = vadd.f32 %v2680_v19, %v2590_v13  ;;  %v1562_v22 = vpop.f32.mrb[1].mxu0 }
 0x195   :  { %v2822_v23 = vadd.f32 %v1562_v22, %v554_v14  ;;  %v1742_v14 = vld [vmem:[%s3615_s4] sm:$0xff] }
 0x196   :  { %v1610_v24 = vadd.f32 %v2821_v21, %v1597_v20 }
 0x197   :  { %v1609_v25 = vadd.f32 %v2822_v23, %v1592_v17  ;;  %v2683_v26 = vpop.f32.mrb[2].mxu0 }
 0x198   :  { %v2823_v27 = vadd.f32 %v2683_v26, %v2593_v15  ;;  %v1572_v28 = vpop.f32.mrb[3].mxu0  ;;  %v1614_v32 = vmul.f32 %v1610_v24, %v1610_v24 }
 0x199   :  { %v1613_v29 = vmul.f32 %v1609_v25, %v1609_v25  ;;  %v2824_v31 = vadd.f32 %v1572_v28, %v564_v16 }
 0x19a   :  { %v1612_v33 = vadd.f32 %v2823_v27, %v1607_v30 }
 0x19b   :  { %v1611_v34 = vadd.f32 %v2824_v31, %v1602_v18  ;;  %2714 = vmatprep.mubr.msk.f32.mxu1 %vm1632_vm2, %v1613_v29 }
 0x19c   :  { %2715 = vmatmul.mubr.msk.f32.vlgmr.msra.gmra.mrb[4].mxu1 %vm1632_vm2, %v1614_v32  ;;  %v1616_v36 = vmul.f32 %v1612_v33, %v1612_v33 }
 0x19d   :  { %v1615_v35 = vmul.f32 %v1611_v34, %v1611_v34 }
 0x19f   :  { %2717 = vmatprep.mubr.msk.f32.mxu1 %vm1632_vm2, %v1615_v35 }
 0x1a0   :  { %2718 = vmatmul.mubr.msk.f32.gmra.mrb[6].mxu1 %vm1632_vm2, %v1616_v36 }
 0x26f   :  { %v2716_v39 = vpop.f32.mrb[4].mxu1 }
 0x270   :  { %3025 = vlog2.f32 %v2716_v39  ;;  %v1715_v40 = vpop.f32.mrb[5].mxu1 }
 0x271   :  { %3027 = vlog2.f32 %v1715_v40 }
 0x273   :  { %v2719_v41 = vpop.f32.mrb[6].mxu1 }
 0x274   :  { %v1725_v42 = vpop.f32.mrb[7].mxu1  ;;  %3029 = vlog2.f32 %v2719_v41 }
 0x275   :  { %3031 = vlog2.f32 %v1725_v42 }
 0x27a   :  { %v3026_v43 = vpop.eup %3025 }
 0x27b   :  { %v1737_v44 = vmul.f32 0.6931472, %v3026_v43  ;;  %v3028_v51 = vpop.eup %3027 }
 0x27c   :  { %v1735_v52 = vmul.f32 0.6931472, %v3028_v51 }
 0x27d   :  { %1815 = vperm.xlu0 %2978, %v1737_v44   ;;  %1775 = vperm.xlu1 %2977, %v1737_v44  }
 0x27e   :  { %v3030_v56 = vpop.eup %3029 }
 0x27f   :  { %v1741_v57 = vmul.f32 0.6931472, %v3030_v56  ;;  %v3032_v58 = vpop.eup %3031 }
 0x280   :  { %v3458_v59 = vmul.f32 0.6931472, %v3032_v58 }
 0x281   :  { %2981 = vset.pattern.permute.xlu0 %v3077_v45  ;;  %2979 = vset.pattern.permute.xlu1 %v3078_v46 }
 0x282   :  { %1935 = vperm.xlu0 %2981, %v1737_v44   ;;  %1855 = vperm.xlu1 %2979, %v1737_v44  }
 0x286   :  { %2984 = vset.pattern.permute.xlu0 %v3079_v47  ;;  %2980 = vset.pattern.permute.xlu1 %v3080_v48 }
 0x287   :  { %2055 = vperm.xlu0 %2984, %v1737_v44   ;;  %1895 = vperm.xlu1 %2980, %v1737_v44  }
 0x28b   :  { %2987 = vset.pattern.permute.xlu0 %v3081_v49  ;;  %2982 = vset.pattern.permute.xlu1 %v3082_v50 }
 0x28c   :  { %2175 = vperm.xlu0 %2987, %v1737_v44   ;;  %1975 = vperm.xlu1 %2982, %v1737_v44  }
 0x290   :  { %2989 = vset.pattern.permute.xlu0 %v3075_v37  ;;  %2983 = vset.pattern.permute.xlu1 %v3083_v53 }
 0x291   :  { %2015 = vperm.xlu1 %2983, %v1737_v44   ;;  %1771 = vperm.xlu0 %2989, %v1735_v52  }
 0x295   :  { %2985 = vset.pattern.permute.xlu1 %v3084_v54  ;;  %2991 = vset.pattern.permute.xlu0 %v3078_v46 }
 0x296   :  { %2095 = vperm.xlu1 %2985, %v1737_v44   ;;  %1851 = vperm.xlu0 %2991, %v1735_v52  }
 0x29a   :  { %2986 = vset.pattern.permute.xlu1 %v3085_v55  ;;  %2994 = vset.pattern.permute.xlu0 %v3082_v50 }
 0x29b   :  { %2135 = vperm.xlu1 %2986, %v1737_v44   ;;  %1971 = vperm.xlu0 %2994, %v1735_v52  }
 0x29f   :  { %2988 = vset.pattern.permute.xlu1 %v3074_v8  ;;  %2997 = vset.pattern.permute.xlu0 %v3084_v54 }
 0x2a0   :  { %1753 = vperm.xlu1 %2988, %v1737_v44   ;;  %2091 = vperm.xlu0 %2997, %v1735_v52   ;;  %v3094_v44 = vmov 0.0|0.0  }
 0x2a1   :  { %2815 = vmatprep.subr.bf16.mxu1 %v3094_v44 }
 0x2a4   :  { %2990 = vset.pattern.permute.xlu1 %v3076_v38  ;;  %3000 = vset.pattern.permute.xlu0 %v3074_v8 }
 0x2a5   :  { %1811 = vperm.xlu1 %2990, %v1735_v52   ;;  %1748 = vperm.xlu0 %3000, %v1735_v52  }
 0x2a9   :  { %2992 = vset.pattern.permute.xlu1 %v3080_v48  ;;  %3002 = vset.pattern.permute.xlu0 %v3076_v38 }
 0x2aa   :  { %1891 = vperm.xlu1 %2992, %v1735_v52   ;;  %1823 = vperm.xlu0 %3002, %v1741_v57  }
 0x2ae   :  { %2993 = vset.pattern.permute.xlu1 %v3077_v45  ;;  %3005 = vset.pattern.permute.xlu0 %v3077_v45 }
 0x2af   :  { %1931 = vperm.xlu1 %2993, %v1735_v52   ;;  %1943 = vperm.xlu0 %3005, %v1741_v57  }
 0x2b3   :  { %2995 = vset.pattern.permute.xlu1 %v3083_v53  ;;  %3008 = vset.pattern.permute.xlu0 %v3079_v47 }
 0x2b4   :  { %2011 = vperm.xlu1 %2995, %v1735_v52   ;;  %2063 = vperm.xlu0 %3008, %v1741_v57  }
 0x2b8   :  { %2996 = vset.pattern.permute.xlu1 %v3079_v47  ;;  %3012 = vset.pattern.permute.xlu0 %v3074_v8 }
 0x2b9   :  { %2051 = vperm.xlu1 %2996, %v1735_v52   ;;  %1763 = vperm.xlu0 %3012, %v1741_v57  }
 0x2bd   :  { %2998 = vset.pattern.permute.xlu1 %v3085_v55  ;;  %3015 = vset.pattern.permute.xlu0 %v3078_v46 }
 0x2be   :  { %2131 = vperm.xlu1 %2998, %v1735_v52   ;;  %1859 = vperm.xlu0 %3015, %v3458_v59  }
 0x2c2   :  { %2999 = vset.pattern.permute.xlu1 %v3081_v49  ;;  %3018 = vset.pattern.permute.xlu0 %v3082_v50 }
 0x2c3   :  { %2171 = vperm.xlu1 %2999, %v1735_v52   ;;  %1979 = vperm.xlu0 %3018, %v3458_v59  }
 0x2c7   :  { %3001 = vset.pattern.permute.xlu1 %v3075_v37  ;;  %3021 = vset.pattern.permute.xlu0 %v3084_v54 }
 0x2c8   :  { %1783 = vperm.xlu1 %3001, %v1741_v57   ;;  %2099 = vperm.xlu0 %3021, %v3458_v59  }
 0x2cc   :  { %3003 = vset.pattern.permute.xlu1 %v3078_v46  ;;  %3023 = vset.pattern.permute.xlu0 %v3081_v49  ;;  %v3526_v46 = vld [vmem:[%s3615_s4 + $0x18] sm:$0xff] }
 0x2cd   :  { %1863 = vperm.xlu1 %3003, %v1741_v57   ;;  %2179 = vperm.xlu0 %3023, %v3458_v59  }
 0x2d1   :  { %3004 = vset.pattern.permute.xlu1 %v3080_v48 }
 0x2d2   :  { %1903 = vperm.xlu1 %3004, %v1741_v57  }
 0x2d6   :  { %3006 = vset.pattern.permute.xlu1 %v3082_v50 }
 0x2d7   :  { %1983 = vperm.xlu1 %3006, %v1741_v57  }
 0x2db   :  { %3007 = vset.pattern.permute.xlu1 %v3083_v53 }
 0x2dc   :  { %2023 = vperm.xlu1 %3007, %v1741_v57  }
 0x2e0   :  { %3009 = vset.pattern.permute.xlu1 %v3084_v54 }
 0x2e1   :  { %2103 = vperm.xlu1 %3009, %v1741_v57  }
 0x2e5   :  { %3010 = vset.pattern.permute.xlu1 %v3085_v55 }
 0x2e6   :  { %2143 = vperm.xlu1 %3010, %v1741_v57  }
 0x2ea   :  { %3011 = vset.pattern.permute.xlu1 %v3081_v49 }
 0x2eb   :  { %2183 = vperm.xlu1 %3011, %v1741_v57  }
 0x2ef   :  { %3013 = vset.pattern.permute.xlu1 %v3075_v37 }
 0x2f0   :  { %1779 = vperm.xlu1 %3013, %v3458_v59  }
 0x2f4   :  { %3014 = vset.pattern.permute.xlu1 %v3076_v38 }
 0x2f5   :  { %1819 = vperm.xlu1 %3014, %v3458_v59  }
 0x2f9   :  { %3016 = vset.pattern.permute.xlu1 %v3080_v48 }
 0x2fa   :  { %1899 = vperm.xlu1 %3016, %v3458_v59  }
 0x2fc   :  { %v1816_v61 = vpop.permute.xlu0 %1815  ;;  %v1776_v62 = vpop.permute.xlu1 %1775 }
 0x2fd   :  { %v1787_v63 = vmul.f32 %v1776_v62, %v1743_v60  ;;  %v1827_v0 = vmul.f32 %v1816_v61, %v1743_v60 }
 0x2fe   :  { %3017 = vset.pattern.permute.xlu1 %v3077_v45 }
 0x2ff   :  { %1796 = vrot.lane.b32.xlu0 %v1787_v63, %s3071_s18  ;;  %1939 = vperm.xlu1 %3017, %v3458_v59  }
 0x301   :  { %v1936_v1 = vpop.permute.xlu0 %1935  ;;  %v1856_v2 = vpop.permute.xlu1 %1855 }
 0x302   :  { %v1867_v3 = vmul.f32 %v1856_v2, %v1743_v60  ;;  %v1947_v10 = vmul.f32 %v1936_v1, %v1743_v60 }
 0x303   :  { %1836 = vrot.lane.b32.xlu0 %v1827_v0, %s3064_s11  ;;  %3019 = vset.pattern.permute.xlu1 %v3083_v53 }
 0x304   :  { %2019 = vperm.xlu1 %3019, %v3458_v59  }
 0x306   :  { %v2056_v4 = vpop.permute.xlu0 %2055  ;;  %v1896_v5 = vpop.permute.xlu1 %1895 }
 0x307   :  { %1876 = vrot.lane.b32.xlu0 %v1867_v3, %s3072_s19  ;;  %v1907_v6 = vmul.f32 %v1896_v5, %v1743_v60  ;;  %v2067_v19 = vmul.f32 %v2056_v4, %v1743_v60 }
 0x308   :  { %3020 = vset.pattern.permute.xlu1 %v3079_v47 }
 0x309   :  { %2059 = vperm.xlu1 %3020, %v3458_v59  }
 0x30b   :  { %v2176_v7 = vpop.permute.xlu0 %2175  ;;  %v1976_v9 = vpop.permute.xlu1 %1975  ;;  %1916 = vrot.lane.b32.xlu0 %v1907_v6, %s3086_s1 }
 0x30c   :  { %v1987_v13 = vmul.f32 %v1976_v9, %v1743_v60  ;;  %v2187_v28 = vmul.f32 %v2176_v7, %v1743_v60  ;;  %v3555_v7 = vld [vmem:[%s3615_s4 + $0x10] sm:$0xff] }
 0x30d   :  { %3022 = vset.pattern.permute.xlu1 %v3085_v55 }
 0x30e   :  { %2139 = vperm.xlu1 %3022, %v3458_v59  }
 0x30f   :  { %1956 = vrot.lane.b32.xlu0 %v1947_v10, %s3087_s0 }
 0x310   :  { %v2016_v11 = vpop.permute.xlu1 %2015  ;;  %v1772_v12 = vpop.permute.xlu0 %1771 }
 0x311   :  { %v2027_v15 = vmul.f32 %v2016_v11, %v1743_v60  ;;  %v1786_v16 = vmul.f32 %v1772_v12, %v1742_v14 }
 0x312   :  { %3024 = vset.pattern.permute.xlu1 %v3074_v8 }
 0x313   :  { %1996 = vrot.lane.b32.xlu0 %v1987_v13, %s3088_s14  ;;  %1758 = vperm.xlu1 %3024, %v3458_v59  }
 0x315   :  { %v2096_v17 = vpop.permute.xlu1 %2095  ;;  %v1852_v18 = vpop.permute.xlu0 %1851 }
 0x316   :  { %v2107_v8 = vmul.f32 %v2096_v17, %v1743_v60  ;;  %v1866_v31 = vmul.f32 %v1852_v18, %v1742_v14 }
 0x317   :  { %2036 = vrot.lane.b32.xlu0 %v2027_v15, %s3089_s15  ;;  %1794 = vrot.lane.b32.xlu1 %v1786_v16, %s3071_s18 }
 0x31a   :  { %v2136_v20 = vpop.permute.xlu1 %2135  ;;  %v1972_v21 = vpop.permute.xlu0 %1971 }
 0x31b   :  { %2076 = vrot.lane.b32.xlu0 %v2067_v19, %s3090_s16  ;;  %v2147_v25 = vmul.f32 %v2136_v20, %v1743_v60  ;;  %v1986_v37 = vmul.f32 %v1972_v21, %v1742_v14 }
 0x31f   :  { %v1754_v22 = vpop.permute.xlu1 %1753  ;;  %v2092_v23 = vpop.permute.xlu0 %2091  ;;  %2116 = vrot.lane.b32.xlu0 %v2107_v8, %s3091_s17 }
 0x320   :  { %v3508_v24 = vmul.f32 %v1754_v22, %v1743_v60  ;;  %v2106_v42 = vmul.f32 %v2092_v23, %v1742_v14 }
 0x323   :  { %2156 = vrot.lane.b32.xlu0 %v2147_v25, %s3092_s20 }
 0x324   :  { %v1812_v26 = vpop.permute.xlu1 %1811  ;;  %v1749_v27 = vpop.permute.xlu0 %1748 }
 0x325   :  { %v1826_v29 = vmul.f32 %v1812_v26, %v1742_v14  ;;  %v3511_v30 = vmul.f32 %v1749_v27, %v1742_v14 }
 0x327   :  { %2196 = vrot.lane.b32.xlu0 %v2187_v28, %s3093_s21  ;;  %1834 = vrot.lane.b32.xlu1 %v1826_v29, %s3064_s11 }
 0x329   :  { %v1892_v32 = vpop.permute.xlu1 %1891  ;;  %v1824_v49 = vpop.permute.xlu0 %1823 }
 0x32a   :  { %v1906_v33 = vmul.f32 %v1892_v32, %v1742_v14  ;;  %v1829_v51 = vmul.f32 %v1824_v49, %v3526_v46 }
 0x32b   :  { %1874 = vrot.lane.b32.xlu1 %v1866_v31, %s3072_s19 }
 0x32e   :  { %v1932_v34 = vpop.permute.xlu1 %1931  ;;  %v1944_v56 = vpop.permute.xlu0 %1943 }
 0x32f   :  { %1914 = vrot.lane.b32.xlu1 %v1906_v33, %s3086_s1  ;;  %v1946_v35 = vmul.f32 %v1932_v34, %v1742_v14  ;;  %v1949_v58 = vmul.f32 %v1944_v56, %v3526_v46 }
 0x333   :  { %v2012_v36 = vpop.permute.xlu1 %2011  ;;  %1954 = vrot.lane.b32.xlu1 %v1946_v35, %s3087_s0  ;;  %v2064_v61 = vpop.permute.xlu0 %2063  ;;  %v3096_v35 = vmov 0.0  }
 0x334   :  { %v2026_v39 = vmul.f32 %v2012_v36, %v1742_v14  ;;  %v2069_v0 = vmul.f32 %v2064_v61, %v3526_v46  ;;  %2728 = vmatprep.mubr.msk.f32.mxu1 %vm3095_vm3, %v3096_v35 }
 0x337   :  { %1994 = vrot.lane.b32.xlu1 %v1986_v37, %s3088_s14 }
 0x338   :  { %v2052_v38 = vpop.permute.xlu1 %2051  ;;  %v3545_v1 = vpop.permute.xlu0 %1763 }
 0x339   :  { %v2066_v40 = vmul.f32 %v2052_v38, %v1742_v14 }
 0x33b   :  { %2034 = vrot.lane.b32.xlu1 %v2026_v39, %s3089_s15 }
 0x33d   :  { %v2132_v41 = vpop.permute.xlu1 %2131  ;;  %v1860_v4 = vpop.permute.xlu0 %1859 }
 0x33e   :  { %v2146_v45 = vmul.f32 %v2132_v41, %v1742_v14  ;;  %v1868_v16 = vmul.f32 %v1860_v4, %v3555_v7 }
 0x33f   :  { %2074 = vrot.lane.b32.xlu1 %v2066_v40, %s3090_s16 }
 0x342   :  { %v2172_v43 = vpop.permute.xlu1 %2171  ;;  %v1980_v10 = vpop.permute.xlu0 %1979 }
 0x343   :  { %2114 = vrot.lane.b32.xlu1 %v2106_v42, %s3091_s17  ;;  %v2186_v50 = vmul.f32 %v2172_v43, %v1742_v14  ;;  %v1988_v23 = vmul.f32 %v1980_v10, %v3555_v7 }
 0x347   :  { %v1784_v47 = vpop.permute.xlu1 %1783  ;;  %2154 = vrot.lane.b32.xlu1 %v2146_v45, %s3092_s20  ;;  %v2100_v15 = vpop.permute.xlu0 %2099 }
 0x348   :  { %v1789_v48 = vmul.f32 %v1784_v47, %v3526_v46  ;;  %v2108_v32 = vmul.f32 %v2100_v15, %v3555_v7 }
 0x34a   :  { %1800 = vrot.lane.b32.xlu0 %v1789_v48, %s3071_s18 }
 0x34b   :  { %2194 = vrot.lane.b32.xlu1 %v2186_v50, %s3093_s21 }
 0x34c   :  { %v1864_v52 = vpop.permute.xlu1 %1863  ;;  %v2180_v18 = vpop.permute.xlu0 %2179 }
 0x34d   :  { %v1869_v53 = vmul.f32 %v1864_v52, %v3526_v46  ;;  %v2188_v39 = vmul.f32 %v2180_v18, %v3555_v7 }
 0x34e   :  { %1840 = vrot.lane.b32.xlu0 %v1829_v51, %s3064_s11 }
 0x351   :  { %v1904_v54 = vpop.permute.xlu1 %1903 }
 0x352   :  { %1880 = vrot.lane.b32.xlu0 %v1869_v53, %s3072_s19  ;;  %v1909_v55 = vmul.f32 %v1904_v54, %v3526_v46 }
 0x356   :  { %v1984_v57 = vpop.permute.xlu1 %1983  ;;  %1920 = vrot.lane.b32.xlu0 %v1909_v55, %s3086_s1 }
 0x357   :  { %v1989_v60 = vmul.f32 %v1984_v57, %v3526_v46 }
 0x35a   :  { %1960 = vrot.lane.b32.xlu0 %v1949_v58, %s3087_s0 }
 0x35b   :  { %v2024_v59 = vpop.permute.xlu1 %2023 }
 0x35c   :  { %v2029_v62 = vmul.f32 %v2024_v59, %v3526_v46 }
 0x35e   :  { %2000 = vrot.lane.b32.xlu0 %v1989_v60, %s3088_s14 }
 0x360   :  { %v2104_v63 = vpop.permute.xlu1 %2103 }
 0x361   :  { %v2109_v3 = vmul.f32 %v2104_v63, %v3526_v46 }
 0x362   :  { %2040 = vrot.lane.b32.xlu0 %v2029_v62, %s3089_s15 }
 0x365   :  { %v2144_v2 = vpop.permute.xlu1 %2143 }
 0x366   :  { %2080 = vrot.lane.b32.xlu0 %v2069_v0, %s3090_s16  ;;  %v2149_v6 = vmul.f32 %v2144_v2, %v3526_v46 }
 0x36a   :  { %v2184_v5 = vpop.permute.xlu1 %2183  ;;  %2120 = vrot.lane.b32.xlu0 %v2109_v3, %s3091_s17 }
 0x36b   :  { %v2189_v11 = vmul.f32 %v2184_v5, %v3526_v46 }
 0x36e   :  { %2160 = vrot.lane.b32.xlu0 %v2149_v6, %s3092_s20 }
 0x36f   :  { %v1780_v9 = vpop.permute.xlu1 %1779 }
 0x370   :  { %v1788_v12 = vmul.f32 %v1780_v9, %v3555_v7 }
 0x371   :  { %v1797_v21 = vpop.permute.xlu0 %1796 }
 0x372   :  { %2200 = vrot.lane.b32.xlu0 %v2189_v11, %s3093_s21  ;;  %1798 = vrot.lane.b32.xlu1 %v1788_v12, %s3071_s18  ;;  %v1807_v50 = vadd.f32 %v1797_v21, %v3508_v24 }
 0x374   :  { %v1820_v13 = vpop.permute.xlu1 %1819 }
 0x375   :  { %v1828_v14 = vmul.f32 %v1820_v13, %v3555_v7  ;;  %v1837_v25 = vpop.permute.xlu0 %1836 }
 0x376   :  { %v1847_v52 = vadd.f32 %v1837_v25, %v1807_v50 }
 0x377   :  { %1838 = vrot.lane.b32.xlu1 %v1828_v14, %s3064_s11 }
 0x379   :  { %v1900_v17 = vpop.permute.xlu1 %1899  ;;  %v1877_v28 = vpop.permute.xlu0 %1876 }
 0x37a   :  { %v1908_v19 = vmul.f32 %v1900_v17, %v3555_v7  ;;  %v1887_v55 = vadd.f32 %v1877_v28, %v1847_v52 }
 0x37b   :  { %1878 = vrot.lane.b32.xlu1 %v1868_v16, %s3072_s19 }
 0x37d   :  { %v1917_v33 = vpop.permute.xlu0 %1916 }
 0x37e   :  { %v1940_v20 = vpop.permute.xlu1 %1939  ;;  %v1927_v58 = vadd.f32 %v1917_v33, %v1887_v55 }
 0x37f   :  { %1918 = vrot.lane.b32.xlu1 %v1908_v19, %s3086_s1  ;;  %v1948_v8 = vmul.f32 %v1940_v20, %v3555_v7 }
 0x381   :  { %v1957_v38 = vpop.permute.xlu0 %1956 }
 0x382   :  { %v1967_v61 = vadd.f32 %v1957_v38, %v1927_v58 }
 0x383   :  { %1958 = vrot.lane.b32.xlu1 %v1948_v8, %s3087_s0  ;;  %v2020_v22 = vpop.permute.xlu1 %2019 }
 0x384   :  { %v2028_v27 = vmul.f32 %v2020_v22, %v3555_v7 }
 0x385   :  { %v1997_v41 = vpop.permute.xlu0 %1996 }
 0x386   :  { %v2007_v63 = vadd.f32 %v1997_v41, %v1967_v61 }
 0x387   :  { %1998 = vrot.lane.b32.xlu1 %v1988_v23, %s3088_s14 }
 0x388   :  { %v2060_v26 = vpop.permute.xlu1 %2059 }
 0x389   :  { %v2068_v29 = vmul.f32 %v2060_v26, %v3555_v7  ;;  %v2037_v45 = vpop.permute.xlu0 %2036 }
 0x38a   :  { %v2047_v4 = vadd.f32 %v2037_v45, %v2007_v63 }
 0x38b   :  { %2038 = vrot.lane.b32.xlu1 %v2028_v27, %s3089_s15 }
 0x38d   :  { %v2140_v31 = vpop.permute.xlu1 %2139  ;;  %v2077_v48 = vpop.permute.xlu0 %2076 }
 0x38e   :  { %v2148_v36 = vmul.f32 %v2140_v31, %v3555_v7  ;;  %v2087_v24 = vadd.f32 %v2077_v48, %v2047_v4  ;;  %v1769_v31 = vmul.f32 %v3545_v1, %v3526_v46 }
 0x38f   :  { %2078 = vrot.lane.b32.xlu1 %v2068_v29, %s3090_s16 }
 0x391   :  { %v2117_v57 = vpop.permute.xlu0 %2116 }
 0x392   :  { %v3576_v34 = vpop.permute.xlu1 %1758  ;;  %v2127_v9 = vadd.f32 %v2117_v57, %v2087_v24 }
 0x393   :  { %2118 = vrot.lane.b32.xlu1 %v2108_v32, %s3091_s17  ;;  %v1768_v32 = vmul.f32 %v3576_v34, %v3555_v7 }
 0x395   :  { %v2157_v2 = vpop.permute.xlu0 %2156 }
 0x396   :  { %v1795_v37 = vpop.permute.xlu1 %1794  ;;  %v2167_v12 = vadd.f32 %v2157_v2, %v2127_v9  ;;  %v2434_v2 = vld [vmem:[%s3617_s6] ss:$0 sm:$0xff] }
 0x397   :  { %2158 = vrot.lane.b32.xlu1 %v2148_v36, %s3092_s20  ;;  %v1806_v51 = vadd.f32 %v1795_v37, %v3511_v30 }
 0x399   :  { %v2197_v11 = vpop.permute.xlu0 %2196 }
 0x39a   :  { %v1835_v40 = vpop.permute.xlu1 %1834  ;;  %v2207_v15 = vadd.f32 %v2197_v11, %v2167_v12 }
 0x39b   :  { %2198 = vrot.lane.b32.xlu1 %v2188_v39, %s3093_s21  ;;  %v1846_v53 = vadd.f32 %v1835_v40, %v1806_v51 }
 0x39e   :  { %v1875_v42 = vpop.permute.xlu1 %1874 }
 0x39f   :  { %v1886_v56 = vadd.f32 %v1875_v42, %v1846_v53 }
 0x3a2   :  { %v1915_v43 = vpop.permute.xlu1 %1914 }
 0x3a3   :  { %v1926_v59 = vadd.f32 %v1915_v43, %v1886_v56 }
 0x3a6   :  { %v1955_v47 = vpop.permute.xlu1 %1954 }
 0x3a7   :  { %v1966_v62 = vadd.f32 %v1955_v47, %v1926_v59 }
 0x3aa   :  { %v1995_v49 = vpop.permute.xlu1 %1994 }
 0x3ab   :  { %v2006_v0 = vadd.f32 %v1995_v49, %v1966_v62 }
 0x3ae   :  { %v2035_v54 = vpop.permute.xlu1 %2034 }
 0x3af   :  { %v2046_v5 = vadd.f32 %v2035_v54, %v2006_v0  ;;  %v2210_v0 = vld [vmem:[%s3616_s5] sm:$0x3]  ;;  %s3097_s5 = smov [#allocation2]  }
 0x3b0   :  { %s2313_s6 = sshll.u32 %s3097_s5, 4  ;;  %s2314_s6 = int_to_ptr.vmem [resolvable:$true] %s2313_s6 }
 0x3b1   :  { %s3037_s26 = scalar_lea.vmem %s2314_s6, 32  ;;  %p3042_p1 = scmp.lt.s32.totalorder %s2314_s6, %s2314_s6 }
 0x3b2   :  { %v2075_v60 = vpop.permute.xlu1 %2074  ;;  %p3038_p0 = scmp.ne.s32.totalorder %s2314_s6, %s3037_s26  ;;  %p3043_p2 = scmp.lt.s32.totalorder %s3037_s26, %s3037_s26 }
 0x3b3   :  { %v2086_v6 = vadd.f32 %v2075_v60, %v2046_v5 }
 0x3b4   :  { %p3044_p3 = por %p3043_p2, %p3042_p1 }
 0x3b6   :  { %v2115_v3 = vpop.permute.xlu1 %2114  ;;  %p3045_p4 = pnand %p3044_p3, %p3038_p0 }
 0x3b7   :  { %v2126_v10 = vadd.f32 %v2115_v3, %v2086_v6 }
 0x3ba   :  { %v2155_v30 = vpop.permute.xlu1 %2154 }
 0x3bb   :  { %v2166_v13 = vadd.f32 %v2155_v30, %v2126_v10 }
 0x3bc   :  { %v1801_v18 = vpop.permute.xlu0 %1800 }
 0x3bd   :  { %v1809_v35 = vadd.f32 %v1801_v18, %v1769_v31 }
 0x3be   :  { %v2195_v14 = vpop.permute.xlu1 %2194 }
 0x3bf   :  { %v2206_v16 = vadd.f32 %v2195_v14, %v2166_v13 }
 0x3c0   :  { %v1841_v19 = vpop.permute.xlu0 %1840 }
 0x3c1   :  { %v2816_v17 = vpack.c.bf16 %v2207_v15, %v2206_v16  ;;  %v1849_v37 = vadd.f32 %v1841_v19, %v1809_v35 }
 0x3c3   :  { %2817 = vmatpush3.bf16.msra.mxu1 %v2816_v17 }
 0x3c4   :  { %2818 = vmatprep.subr.bf16.mxu1 %v3094_v44  ;;  %v1881_v20 = vpop.permute.xlu0 %1880 }
 0x3c5   :  { %v1889_v40 = vadd.f32 %v1881_v20, %v1849_v37 }
 0x3c8   :  { %v1921_v21 = vpop.permute.xlu0 %1920 }
 0x3c9   :  { %v1929_v43 = vadd.f32 %v1921_v21, %v1889_v40 }
 0x3cc   :  { %v1961_v22 = vpop.permute.xlu0 %1960 }
 0x3cd   :  { %v1969_v48 = vadd.f32 %v1961_v22, %v1929_v43 }
 0x3d0   :  { %v2001_v25 = vpop.permute.xlu0 %2000 }
 0x3d1   :  { %v2009_v50 = vadd.f32 %v2001_v25, %v1969_v48 }
 0x3d4   :  { %v2041_v28 = vpop.permute.xlu0 %2040 }
 0x3d5   :  { %v2049_v7 = vadd.f32 %v2041_v28, %v2009_v50 }
 0x3d8   :  { %v2081_v33 = vpop.permute.xlu0 %2080 }
 0x3d9   :  { %v2089_v52 = vadd.f32 %v2081_v33, %v2049_v7 }
 0x3dc   :  { %v2121_v42 = vpop.permute.xlu0 %2120 }
 0x3dd   :  { %v2129_v55 = vadd.f32 %v2121_v42, %v2089_v52 }
 0x3e0   :  { %v2161_v1 = vpop.permute.xlu0 %2160 }
 0x3e1   :  { %v2169_v58 = vadd.f32 %v2161_v1, %v2129_v55 }
 0x3e4   :  { %v1799_v8 = vpop.permute.xlu1 %1798  ;;  %v2201_v57 = vpop.permute.xlu0 %2200 }
 0x3e5   :  { %v1808_v36 = vadd.f32 %v1799_v8, %v1768_v32  ;;  %v2209_v61 = vadd.f32 %v2201_v57, %v2169_v58 }
 0x3e9   :  { %v1839_v23 = vpop.permute.xlu1 %1838 }
 0x3ea   :  { %v1848_v38 = vadd.f32 %v1839_v23, %v1808_v36 }
 0x3ed   :  { %v1879_v26 = vpop.permute.xlu1 %1878 }
 0x3ee   :  { %v1888_v41 = vadd.f32 %v1879_v26, %v1848_v38 }
 0x3f1   :  { %v1919_v27 = vpop.permute.xlu1 %1918 }
 0x3f2   :  { %v1928_v45 = vadd.f32 %v1919_v27, %v1888_v41 }
 0x3f5   :  { %v1959_v29 = vpop.permute.xlu1 %1958 }
 0x3f6   :  { %v1968_v49 = vadd.f32 %v1959_v29, %v1928_v45 }
 0x3f9   :  { %v1999_v44 = vpop.permute.xlu1 %1998 }
 0x3fa   :  { %v2008_v46 = vadd.f32 %v1999_v44, %v1968_v49 }
 0x3fd   :  { %v2039_v39 = vpop.permute.xlu1 %2038 }
 0x3fe   :  { %v2048_v34 = vadd.f32 %v2039_v39, %v2008_v46 }
 0x401   :  { %v2079_v47 = vpop.permute.xlu1 %2078 }
 0x402   :  { %v2088_v53 = vadd.f32 %v2079_v47, %v2048_v34 }
 0x405   :  { %v2119_v51 = vpop.permute.xlu1 %2118 }
 0x406   :  { %v2128_v56 = vadd.f32 %v2119_v51, %v2088_v53 }
 0x409   :  { %v2159_v54 = vpop.permute.xlu1 %2158 }
 0x40a   :  { %v2168_v59 = vadd.f32 %v2159_v54, %v2128_v56 }
 0x40d   :  { %v2199_v60 = vpop.permute.xlu1 %2198 }
 0x40e   :  { %v2208_v62 = vadd.f32 %v2199_v60, %v2168_v59 }
 0x410   :  { %v2819_v63 = vpack.c.bf16 %v2209_v61, %v2208_v62 }
 0x412   :  { %2820 = vmatpush3.bf16.msra.mxu1 %v2819_v63 }
 0x415   :  { %2729 = vmatmul.mubr.msk.f32.vlgmr.msra.gmra.mrb[8].mxu1 %vm2218_vm4, %v2210_v0 }
 0x4e8   :  { %v2288_v3 = vpop.f32.mrb[8].mxu1 }
 0x4e9   :  { %v2289_v4 = vadd.f32 %v2434_v2, %v2288_v3  ;;  %v2730_v5 = vpop.f32.mrb[9].mxu1 }
 0x4eb   :  { %v2293_v24 = vsel %vm2292_vm5, %v2289_v4, -inf }
 0x4ec   :  { %2294 = vmax.xlane.f32.xlu1 %v2293_v24 }
 0x579   :  { %v2295_v6 = vpop.xlane.xlu1 %2294 }
 0x57a   :  { %v2296_v30 = vsub.f32 %v2289_v4, %v2295_v6 }
 0x57c   :  { %v2297_v9 = vmul.f32 1.442695, %v2296_v30 }
 0x57e   :  { %3033 = vpow2.f32 %v2297_v9 }
 0x588   :  { %v3034_v10 = vpop.eup %3033 }
 0x589   :  { %v2299_v11 = vsel %vm2292_vm5, %v3034_v10, 0.0 }
 0x58a   :  { %2300 = vadd.xlane.f32.xlu0 %v2299_v11 }
 0x617   :  { %v2301_v12 = vpop.xlane.xlu0 %2300 }
 0x618   :  { %3035 = vlog2.f32 %v2301_v12 }
 0x622   :  { %v3036_v13 = vpop.eup %3035 }
 0x623   :  { %v2303_v14 = vmul.f32 0.6931472, %v3036_v13 }
 0x625   :  { %v2304_v15 = vadd.f32 %v2303_v14, %v2295_v6 }
 0x627   :  { %v2305_v16 = vsub.f32 %v2289_v4, %v2304_v15 }
 0x629   :  { %2306 = vst.msk [vmem:[#allocation2] sm:$0x3] %vm2292_vm5, %v2305_v16 }
 0x62a   :  { %3048 = shalt.err (!%p3045_p4)
}
 0x62b   :  { %s3049_s29 = scalar_lea.hbm %s3618_s7, 32 }
 0x62c   :  { %p3050_p5 = scmp.ne.s32.totalorder %s3618_s7, %s3049_s29  ;;  %p3053_p6 = scmp.lt.u32.totalorder %s3049_s29, %s3618_s7 }
 0x62e   :  { %p3055_p7 = pnand %p3053_p6, %p3050_p5 }
 0x630   :  { %3058 = shalt.err (!%p3055_p7)
}
 0x631   :  { %2316 = dma.vmem_to_hbm [thread:$0]  %s2314_s6, 32, %s3618_s7, [#allocation3]  }
 0x632   :  { %3059 = dma.done.wait [#allocation3], 32  }
 0x633   :  { %3060 = vsyncadd [#allocation3], 4294967264 }
 0x634   :  { %2320 = vsyncpa [#allocation3], 1 }

</bundles_post_ra>
